<compile_context>
chip_gen: v7x
topology: tpu7x:2x2x1
jax: 0.10.0
libtpu: 0.0.40
codegen_flags: <defaults>
</compile_context>

<pallas_src>
import functools
import math

import jax
import jax.numpy as jnp
from jax.experimental import pallas as pl
from jax.experimental.pallas import tpu as pltpu

# MXU input dtype (f32 accumulation always). bf16 is native on v5e/v6e/v7x MXUs; use
# jnp.float32 here if exact f32 matmul semantics are required.
MXU_DTYPE = jnp.bfloat16
NORM_EPS = 1e-6
VMEM_LIMIT = 32 * 1024 * 1024  # conservative scoped-VMEM budget, valid on v5e/v6e/v7x


# ----------------------------- in-kernel helpers ---------------------------

def _dot(a, b):
    """a[m,k] @ b[k,n] -> f32[m,n]; MXU with bf16 inputs, f32 accumulation."""
    return jax.lax.dot_general(
        a.astype(MXU_DTYPE), b.astype(MXU_DTYPE),
        dimension_numbers=(((1,), (0,)), ((), ())),
        preferred_element_type=jnp.float32)


def _dot_nt(a, b):
    """a[m,k] x b[n,k] -> f32[m,n]; contracts dim 1 of both (no explicit transpose)."""
    return jax.lax.dot_general(
        a.astype(MXU_DTYPE), b.astype(MXU_DTYPE),
        dimension_numbers=(((1,), (1,)), ((), ())),
        preferred_element_type=jnp.float32)


def _annotated_norm(x, alpha, bias, eps):
    """alpha * (x - mean) / (std_unbiased + eps) + bias   (torch.std semantics)."""
    d = x.shape[-1]
    mean = jnp.mean(x, axis=-1, keepdims=True)
    xc = x - mean
    var_unb = jnp.sum(xc * xc, axis=-1, keepdims=True) * (1.0 / (d - 1))
    return alpha * xc / (jnp.sqrt(var_unb) + eps) + bias


def _mha(q, k, v, mask, wo, bo, nhead, d_model):
    """Multi-head attention with heads kept in the lane dimension.

    q: [Sq, D], k/v: [Sk, D], mask: [Sq, Sk] (0 = masked), wo: [D, D] f32, bo: [1, D].
    The output projection is folded in per head: out = bo + sum_h ctx_h @ Wo[h*dk:(h+1)*dk,:]
    which avoids a lane-dim concatenation of dk-wide context tiles.
    """
    dk = d_model // nhead
    scale = 1.0 / math.sqrt(dk)
    neg_inf = jnp.float32(-1e9)
    out = bo  # [1, D], broadcasts over query rows
    for h in range(nhead):
        sl = slice(h * dk, (h + 1) * dk)
        s_h = _dot_nt(q[:, sl], k[:, sl]) * scale          # [Sq, Sk] f32
        s_h = jnp.where(mask == 0.0, neg_inf, s_h)         # mask fill stays f32
        s_h = s_h - jnp.max(s_h, axis=-1, keepdims=True)
        p_h = jnp.exp(s_h)
        p_h = p_h * pl.reciprocal(jnp.sum(p_h, axis=-1, keepdims=True), approx=True)
        ctx_h = _dot(p_h, v[:, sl])                        # [Sq, dk]
        out = out + _dot(ctx_h, wo[sl, :])                 # accumulate Wo rows per head
    return out


# ----------------------------- Pallas kernels ------------------------------

def _upsample_pe_kernel(x_ref, w_ref, pe_ref, o_ref, *, scale):
    # (trg @ W_up) * sqrt(d_model) + PE[:S]    — one batch element per grid step
    o_ref[0] = _dot(x_ref[0], w_ref[...]) * scale + pe_ref[...]


def _self_attn_block_kernel(x_ref, mask_ref, na_ref, nb_ref,
                            wqkv_ref, bqkv_ref, wo_ref, bo_ref, o_ref,
                            *, nhead, d_model, eps):
    # x + SelfAttn(Norm1(x), trg_mask), one batch element per grid step
    x = x_ref[0]                                                 # [S, D] f32
    x2 = _annotated_norm(x, na_ref[...], nb_ref[...], eps)
    qkv = _dot(x2, wqkv_ref[...]) + bqkv_ref[...]                # fused [S, 3D]
    q = qkv[:, :d_model]
    k = qkv[:, d_model:2 * d_model]
    v = qkv[:, 2 * d_model:]
    attn = _mha(q, k, v, mask_ref[0], wo_ref[...], bo_ref[...], nhead, d_model)
    o_ref[0] = x + attn


def _cross_attn_block_kernel(x_ref, enc_ref, mask_ref, na_ref, nb_ref,
                             wq_ref, bq_ref, wkv_ref, bkv_ref, wo_ref, bo_ref, o_ref,
                             *, nhead, d_model, eps):
    # x + CrossAttn(Norm2(x), enc, src_mask), one batch element per grid step
    x = x_ref[0]                                                 # [S, D]
    e = enc_ref[0]                                               # [Se, D]
    x2 = _annotated_norm(x, na_ref[...], nb_ref[...], eps)
    q = _dot(x2, wq_ref[...]) + bq_ref[...]                      # [S, D]
    kv = _dot(e, wkv_ref[...]) + bkv_ref[...]                    # fused [Se, 2D]
    k = kv[:, :d_model]
    v = kv[:, d_model:]
    attn = _mha(q, k, v, mask_ref[0], wo_ref[...], bo_ref[...], nhead, d_model)
    o_ref[0] = x + attn


def _ffn_block_kernel(x_ref, na_ref, nb_ref, w1_ref, b1_ref, w2_ref, b2_ref, o_ref, *, eps):
    # x + W2 @ relu(W1 @ Norm3(x) + b1) + b2, one row-tile per grid step
    x = x_ref[...]                                               # [tm, D] f32
    x2 = _annotated_norm(x, na_ref[...], nb_ref[...], eps)
    h = jnp.maximum(_dot(x2, w1_ref[...]) + b1_ref[...], 0.0)    # [tm, d_ff]
    o_ref[...] = x + _dot(h, w2_ref[...]) + b2_ref[...]


def _layernorm_kernel(x_ref, g_ref, b_ref, o_ref):
    # nn.LayerNorm: gamma * (x - mean) / sqrt(var_biased + 1e-5) + beta
    x = x_ref[...]
    mean = jnp.mean(x, axis=-1, keepdims=True)
    xc = x - mean
    var = jnp.mean(xc * xc, axis=-1, keepdims=True)
    o_ref[...] = g_ref[...] * xc * jax.lax.rsqrt(var + 1e-5) + b_ref[...]


# ----------------------------- wrappers -------------------------------------

def _cparams(n_parallel):
    return pltpu.CompilerParams(
        dimension_semantics=("parallel",) * n_parallel,
        vmem_limit_bytes=VMEM_LIMIT,
    )


def _pick_row_tile(m, cap=512):
    # Largest row tile that divides M and respects the 8-sublane alignment (or is the
    # full M).  Big tiles amortize the ~0.35us/step grid overhead; multiple tiles give
    # the grid a parallel axis v7x can shard across its 2 TensorCores.
    if m <= cap:
        return m
    for t in range(cap - cap % 8, 7, -8):
        if m % t == 0:
            return t
    return m


def fused_upsample_pe(trg_f32, up_w, pe_table, d_model):
    b, s, in_d = trg_f32.shape
    pe_slice = pe_table[:s]                                      # [S, D] f32
    kern = functools.partial(_upsample_pe_kernel, scale=math.sqrt(d_model))
    full = lambda i: (0, 0)
    return pl.pallas_call(
        kern,
        out_shape=jax.ShapeDtypeStruct((b, s, d_model), jnp.float32),
        grid=(b,),
        in_specs=[
            pl.BlockSpec((1, s, in_d), lambda i: (i, 0, 0)),
            pl.BlockSpec((in_d, d_model), full),
            pl.BlockSpec((s, d_model), full),
        ],
        out_specs=pl.BlockSpec((1, s, d_model), lambda i: (i, 0, 0)),
        compiler_params=_cparams(1),
    )(trg_f32, up_w, pe_slice)


def fused_self_attn_block(x, mask, lp, nhead):
    b, s, d = x.shape
    kern = functools.partial(_self_attn_block_kernel, nhead=nhead, d_model=d, eps=NORM_EPS)
    full = lambda i: (0, 0)
    return pl.pallas_call(
        kern,
        out_shape=jax.ShapeDtypeStruct((b, s, d), jnp.float32),
        grid=(b,),
        in_specs=[
            pl.BlockSpec((1, s, d), lambda i: (i, 0, 0)),
            pl.BlockSpec((1, s, s), lambda i: (i, 0, 0)),
            pl.BlockSpec((1, d), full), pl.BlockSpec((1, d), full),
            pl.BlockSpec((d, 3 * d), full), pl.BlockSpec((1, 3 * d), full),
            pl.BlockSpec((d, d), full), pl.BlockSpec((1, d), full),
        ],
        out_specs=pl.BlockSpec((1, s, d), lambda i: (i, 0, 0)),
        compiler_params=_cparams(1),
    )(x, mask,
      lp["n1_a"].reshape(1, d), lp["n1_b"].reshape(1, d),
      lp["attn1_wqkv"], lp["attn1_bqkv"].reshape(1, 3 * d),
      lp["attn1_wo"], lp["attn1_bo"].reshape(1, d))


def fused_cross_attn_block(x, enc, mask, lp, nhead):
    b, s, d = x.shape
    se = enc.shape[1]
    kern = functools.partial(_cross_attn_block_kernel, nhead=nhead, d_model=d, eps=NORM_EPS)
    full = lambda i: (0, 0)
    return pl.pallas_call(
        kern,
        out_shape=jax.ShapeDtypeStruct((b, s, d), jnp.float32),
        grid=(b,),
        in_specs=[
            pl.BlockSpec((1, s, d), lambda i: (i, 0, 0)),
            pl.BlockSpec((1, se, d), lambda i: (i, 0, 0)),
            pl.BlockSpec((1, s, se), lambda i: (i, 0, 0)),
            pl.BlockSpec((1, d), full), pl.BlockSpec((1, d), full),
            pl.BlockSpec((d, d), full), pl.BlockSpec((1, d), full),
            pl.BlockSpec((d, 2 * d), full), pl.BlockSpec((1, 2 * d), full),
            pl.BlockSpec((d, d), full), pl.BlockSpec((1, d), full),
        ],
        out_specs=pl.BlockSpec((1, s, d), lambda i: (i, 0, 0)),
        compiler_params=_cparams(1),
    )(x, enc, mask,
      lp["n2_a"].reshape(1, d), lp["n2_b"].reshape(1, d),
      lp["attn2_wq"], lp["attn2_bq"].reshape(1, d),
      lp["attn2_wkv"], lp["attn2_bkv"].reshape(1, 2 * d),
      lp["attn2_wo"], lp["attn2_bo"].reshape(1, d))


def fused_ffn_block(x, lp):
    b, s, d = x.shape
    dff = lp["ff_w1"].shape[1]
    m = b * s
    tm = _pick_row_tile(m)
    x2d = x.reshape(m, d)
    kern = functools.partial(_ffn_block_kernel, eps=NORM_EPS)
    full = lambda i: (0, 0)
    out = pl.pallas_call(
        kern,
        out_shape=jax.ShapeDtypeStruct((m, d), jnp.float32),
        grid=(m // tm,),
        in_specs=[
            pl.BlockSpec((tm, d), lambda i: (i, 0)),
            pl.BlockSpec((1, d), full), pl.BlockSpec((1, d), full),
            pl.BlockSpec((d, dff), full), pl.BlockSpec((1, dff), full),
            pl.BlockSpec((dff, d), full), pl.BlockSpec((1, d), full),
        ],
        out_specs=pl.BlockSpec((tm, d), lambda i: (i, 0)),
        compiler_params=_cparams(1),
    )(x2d, lp["n3_a"].reshape(1, d), lp["n3_b"].reshape(1, d),
      lp["ff_w1"], lp["ff_b1"].reshape(1, dff),
      lp["ff_w2"], lp["ff_b2"].reshape(1, d))
    return out.reshape(b, s, d)


def layer_norm(x2d, gamma, beta):
    m, d = x2d.shape
    tm = _pick_row_tile(m)
    full = lambda i: (0, 0)
    return pl.pallas_call(
        _layernorm_kernel,
        out_shape=jax.ShapeDtypeStruct((m, d), jnp.float32),
        grid=(m // tm,),
        in_specs=[
            pl.BlockSpec((tm, d), lambda i: (i, 0)),
            pl.BlockSpec((1, d), full),
            pl.BlockSpec((1, d), full),
        ],
        out_specs=pl.BlockSpec((tm, d), lambda i: (i, 0)),
        compiler_params=_cparams(1),
    )(x2d, gamma.reshape(1, d), beta.reshape(1, d))


# ----------------------------- model ----------------------------------------

def decoder_forward(params, trg, encoder_outputs, src_mask, trg_mask, *, nhead):
    b, s, _ = trg.shape
    d_model = params["pe"].shape[1]
    # dropout layers are identity (eval mode)
    x = fused_upsample_pe(trg.astype(jnp.float32), params["up_w"], params["pe"], d_model)
    enc = encoder_outputs.astype(jnp.float32)
    sm = src_mask.astype(jnp.float32)
    tm = trg_mask.astype(jnp.float32)
    for lp in params["layers"]:
        x = fused_self_attn_block(x, tm, lp, nhead)
        x = fused_cross_attn_block(x, enc, sm, lp, nhead)
        x = fused_ffn_block(x, lp)
    out2d = layer_norm(x.reshape(b * s, d_model), params["ln_g"], params["ln_b"])
    return out2d.reshape(b, s, d_model)


# ----------------------------- init ------------------------------------------

def make_pe_table(max_len, d_model):
    pos = jnp.arange(max_len, dtype=jnp.float32)[:, None]
    i = jnp.arange(0, d_model, 2, dtype=jnp.float32)
    angle = pos / jnp.power(10000.0, i / d_model)
    pe = jnp.zeros((max_len, d_model), jnp.float32)
    pe = pe.at[:, 0::2].set(jnp.sin(angle))
    pe = pe.at[:, 1::2].set(jnp.cos(angle))
    return pe


def init_params(key, d_model, n_layers, d_ff, input_d, max_len, mxu_dtype=MXU_DTYPE):
    keys = iter(jax.random.split(key, 8 + n_layers * 32))

    def w(shape, scale=0.05, dtype=jnp.float32):
        return (jax.random.normal(next(keys), shape, jnp.float32) * scale).astype(dtype)

    layers = []
    for _ in range(n_layers):
        layers.append({
            "n1_a": jnp.ones((d_model,), jnp.float32), "n1_b": jnp.zeros((d_model,), jnp.float32),
            "n2_a": jnp.ones((d_model,), jnp.float32), "n2_b": jnp.zeros((d_model,), jnp.float32),
            "n3_a": jnp.ones((d_model,), jnp.float32), "n3_b": jnp.zeros((d_model,), jnp.float32),
            # self-attention: fused QKV weight [D, 3D]
            "attn1_wqkv": w((d_model, 3 * d_model), dtype=mxu_dtype),
            "attn1_bqkv": w((3 * d_model,)),
            "attn1_wo": w((d_model, d_model)),   # kept f32: sliced per head-row in-kernel
            "attn1_bo": w((d_model,)),
            # cross-attention: Q weight [D, D], fused encoder K/V weight [D, 2D]
            "attn2_wq": w((d_model, d_model), dtype=mxu_dtype),
            "attn2_bq": w((d_model,)),
            "attn2_wkv": w((d_model, 2 * d_model), dtype=mxu_dtype),
            "attn2_bkv": w((2 * d_model,)),
            "attn2_wo": w((d_model, d_model)),
            "attn2_bo": w((d_model,)),
            # feed-forward
            "ff_w1": w((d_model, d_ff), dtype=mxu_dtype), "ff_b1": w((d_ff,)),
            "ff_w2": w((d_ff, d_model), dtype=mxu_dtype), "ff_b2": w((d_model,)),
        })

    return {
        "up_w": w((input_d, d_model), dtype=mxu_dtype),
        "pe": make_pe_table(max_len, d_model),
        "layers": layers,
        "ln_g": jnp.ones((d_model,), jnp.float32),
        "ln_b": jnp.zeros((d_model,), jnp.float32),
    }


# ----------------------------- main -------------------------------------------

if __name__ == "__main__":
    B, S, S_ENC = 2, 8, 8
    INPUT_D, D_MODEL, HEADS, D_FF, N_LAYERS = 16, 32, 4, 64, 2
    MAX_LEN = 64

    root = jax.random.PRNGKey(0)
    k_par, k_trg, k_enc = jax.random.split(root, 3)

    params = init_params(k_par, D_MODEL, N_LAYERS, D_FF, INPUT_D, MAX_LEN)

    trg = jax.random.normal(k_trg, (B, S, INPUT_D), jnp.float32)
    encoder_outputs = jax.random.normal(k_enc, (B, S_ENC, D_MODEL), jnp.float32)

    # causal target mask, all-ones source mask (1 = attend, 0 = masked)
    trg_mask = jnp.tril(jnp.ones((S, S), jnp.float32))[None].repeat(B, axis=0)
    src_mask = jnp.ones((B, S, S_ENC), jnp.float32)

    decoder_fn = jax.jit(decoder_forward, static_argnames=("nhead",))
    out = decoder_fn(params, trg, encoder_outputs, src_mask, trg_mask, nhead=HEADS)
    out = jax.block_until_ready(out)
    assert out.shape == (B, S, D_MODEL) and out.dtype == jnp.float32
    print("KERNEL_OK")
</pallas_src>

<mosaic_0001>
module attributes {stable_mosaic.version = 11 : i64} {
  func.func @_cross_attn_block_kernel(%arg0: i32, %arg1: memref<1x8x32xf32, #tpu.memory_space<vmem>>, %arg2: memref<1x8x32xf32, #tpu.memory_space<vmem>>, %arg3: memref<1x8x8xf32, #tpu.memory_space<vmem>>, %arg4: memref<1x32xf32, #tpu.memory_space<vmem>>, %arg5: memref<1x32xf32, #tpu.memory_space<vmem>>, %arg6: memref<32x32xbf16, #tpu.memory_space<vmem>>, %arg7: memref<1x32xf32, #tpu.memory_space<vmem>>, %arg8: memref<32x64xbf16, #tpu.memory_space<vmem>>, %arg9: memref<1x64xf32, #tpu.memory_space<vmem>>, %arg10: memref<32x32xf32, #tpu.memory_space<vmem>>, %arg11: memref<1x32xf32, #tpu.memory_space<vmem>>, %arg12: memref<1x8x32xf32, #tpu.memory_space<vmem>>) attributes {dimension_semantics = [#tpu.dimension_semantics<parallel>], iteration_bounds = array<i64: 2>, scalar_prefetch = 0 : i64, scratch_operands = 0 : i64, tpu.core_type = #tpu.core_type<tc>, window_params = [{transform_indices = @transform_0, window_bounds = array<i64: 1, 8, 32>}, {transform_indices = @transform_1, window_bounds = array<i64: 1, 8, 32>}, {transform_indices = @transform_2, window_bounds = array<i64: 1, 8, 8>}, {pipeline_mode = #tpu.pipeline_mode<synchronous>, transform_indices = @transform_3, window_bounds = array<i64: 1, 32>}, {pipeline_mode = #tpu.pipeline_mode<synchronous>, transform_indices = @transform_4, window_bounds = array<i64: 1, 32>}, {pipeline_mode = #tpu.pipeline_mode<synchronous>, transform_indices = @transform_5, window_bounds = array<i64: 32, 32>}, {pipeline_mode = #tpu.pipeline_mode<synchronous>, transform_indices = @transform_6, window_bounds = array<i64: 1, 32>}, {pipeline_mode = #tpu.pipeline_mode<synchronous>, transform_indices = @transform_7, window_bounds = array<i64: 32, 64>}, {pipeline_mode = #tpu.pipeline_mode<synchronous>, transform_indices = @transform_8, window_bounds = array<i64: 1, 64>}, {pipeline_mode = #tpu.pipeline_mode<synchronous>, transform_indices = @transform_9, window_bounds = array<i64: 32, 32>}, {pipeline_mode = #tpu.pipeline_mode<synchronous>, transform_indices = @transform_10, window_bounds = array<i64: 1, 32>}, {transform_indices = @transform_11, window_bounds = array<i64: 1, 8, 32>}]} {
    %c0 = arith.constant 0 : index
    %c0_0 = arith.constant 0 : index
    %c0_1 = arith.constant 0 : index
    %0 = vector.load %arg1[%c0, %c0_0, %c0_1] : memref<1x8x32xf32, #tpu.memory_space<vmem>>, vector<1x8x32xf32>
    %1 = vector.shape_cast %0 : vector<1x8x32xf32> to vector<8x32xf32>
    %c0_2 = arith.constant 0 : index
    %c0_3 = arith.constant 0 : index
    %c0_4 = arith.constant 0 : index
    %2 = vector.load %arg2[%c0_2, %c0_3, %c0_4] : memref<1x8x32xf32, #tpu.memory_space<vmem>>, vector<1x8x32xf32>
    %3 = vector.shape_cast %2 : vector<1x8x32xf32> to vector<8x32xf32>
    %c0_5 = arith.constant 0 : index
    %c0_6 = arith.constant 0 : index
    %4 = vector.load %arg4[%c0_5, %c0_6] : memref<1x32xf32, #tpu.memory_space<vmem>>, vector<1x32xf32>
    %c0_7 = arith.constant 0 : index
    %c0_8 = arith.constant 0 : index
    %5 = vector.load %arg5[%c0_7, %c0_8] : memref<1x32xf32, #tpu.memory_space<vmem>>, vector<1x32xf32>
    %cst = arith.constant dense<0.000000e+00> : vector<8xf32>
    %6 = vector.multi_reduction <add>, %1, %cst [1] : vector<8x32xf32> to vector<8xf32>
    %7 = vector.shape_cast %6 : vector<8xf32> to vector<8x1xf32>
    %cst_9 = arith.constant 3.200000e+01 : f32
    %8 = vector.broadcast %cst_9 : f32 to vector<8x1xf32>
    %9 = arith.divf %7, %8 : vector<8x1xf32>
    %10 = vector.broadcast %9 : vector<8x1xf32> to vector<8x32xf32>
    %11 = arith.subf %1, %10 : vector<8x32xf32>
    %12 = arith.mulf %11, %11 : vector<8x32xf32>
    %cst_10 = arith.constant dense<0.000000e+00> : vector<8xf32>
    %13 = vector.multi_reduction <add>, %12, %cst_10 [1] : vector<8x32xf32> to vector<8xf32>
    %14 = vector.shape_cast %13 : vector<8xf32> to vector<8x1xf32>
    %cst_11 = arith.constant 0.0322580636 : f32
    %15 = vector.broadcast %cst_11 : f32 to vector<8x1xf32>
    %16 = arith.mulf %14, %15 : vector<8x1xf32>
    %17 = vector.broadcast %4 : vector<1x32xf32> to vector<8x32xf32>
    %18 = arith.mulf %17, %11 : vector<8x32xf32>
    %19 = math.sqrt %16 : vector<8x1xf32>
    %cst_12 = arith.constant 9.99999997E-7 : f32
    %20 = vector.broadcast %cst_12 : f32 to vector<8x1xf32>
    %21 = arith.addf %19, %20 : vector<8x1xf32>
    %22 = vector.broadcast %21 : vector<8x1xf32> to vector<8x32xf32>
    %23 = arith.divf %18, %22 : vector<8x32xf32>
    %24 = vector.broadcast %5 : vector<1x32xf32> to vector<8x32xf32>
    %25 = arith.addf %23, %24 : vector<8x32xf32>
    %c0_13 = arith.constant 0 : index
    %c0_14 = arith.constant 0 : index
    %26 = vector.load %arg6[%c0_13, %c0_14] : memref<32x32xbf16, #tpu.memory_space<vmem>>, vector<32x32xbf16>
    %27 = arith.truncf %25 : vector<8x32xf32> to vector<8x32xbf16>
    %cst_15 = arith.constant dense<0.000000e+00> : vector<8x32xf32>
    %28 = tpu.matmul %27, %26, %cst_15 {dimension_numbers = #tpu.dot_dimension_numbers<[1], [0], [0], [1], [0, 0, 1, 1], [], []>} : vector<8x32xbf16>, vector<32x32xbf16>, vector<8x32xf32> -> vector<8x32xf32>
    %c0_16 = arith.constant 0 : index
    %c0_17 = arith.constant 0 : index
    %29 = vector.load %arg7[%c0_16, %c0_17] : memref<1x32xf32, #tpu.memory_space<vmem>>, vector<1x32xf32>
    %30 = vector.broadcast %29 : vector<1x32xf32> to vector<8x32xf32>
    %31 = arith.addf %28, %30 : vector<8x32xf32>
    %c0_18 = arith.constant 0 : index
    %c0_19 = arith.constant 0 : index
    %32 = vector.load %arg8[%c0_18, %c0_19] : memref<32x64xbf16, #tpu.memory_space<vmem>>, vector<32x64xbf16>
    %33 = arith.truncf %3 : vector<8x32xf32> to vector<8x32xbf16>
    %cst_20 = arith.constant dense<0.000000e+00> : vector<8x64xf32>
    %34 = tpu.matmul %33, %32, %cst_20 {dimension_numbers = #tpu.dot_dimension_numbers<[1], [0], [0], [1], [0, 0, 1, 1], [], []>} : vector<8x32xbf16>, vector<32x64xbf16>, vector<8x64xf32> -> vector<8x64xf32>
    %c0_21 = arith.constant 0 : index
    %c0_22 = arith.constant 0 : index
    %35 = vector.load %arg9[%c0_21, %c0_22] : memref<1x64xf32, #tpu.memory_space<vmem>>, vector<1x64xf32>
    %36 = vector.broadcast %35 : vector<1x64xf32> to vector<8x64xf32>
    %37 = arith.addf %34, %36 : vector<8x64xf32>
    %38 = vector.extract_strided_slice %37 {offsets = [0, 0], sizes = [8, 32], strides = [1, 1]} : vector<8x64xf32> to vector<8x32xf32>
    %39 = vector.extract_strided_slice %37 {offsets = [0, 32], sizes = [8, 32], strides = [1, 1]} : vector<8x64xf32> to vector<8x32xf32>
    %c0_23 = arith.constant 0 : index
    %c0_24 = arith.constant 0 : index
    %c0_25 = arith.constant 0 : index
    %40 = vector.load %arg3[%c0_23, %c0_24, %c0_25] : memref<1x8x8xf32, #tpu.memory_space<vmem>>, vector<1x8x8xf32>
    %41 = vector.shape_cast %40 : vector<1x8x8xf32> to vector<8x8xf32>
    %c0_26 = arith.constant 0 : index
    %c0_27 = arith.constant 0 : index
    %42 = vector.load %arg10[%c0_26, %c0_27] : memref<32x32xf32, #tpu.memory_space<vmem>>, vector<32x32xf32>
    %c0_28 = arith.constant 0 : index
    %c0_29 = arith.constant 0 : index
    %43 = vector.load %arg11[%c0_28, %c0_29] : memref<1x32xf32, #tpu.memory_space<vmem>>, vector<1x32xf32>
    %44 = vector.extract_strided_slice %31 {offsets = [0, 0], sizes = [8, 8], strides = [1, 1]} : vector<8x32xf32> to vector<8x8xf32>
    %45 = vector.extract_strided_slice %38 {offsets = [0, 0], sizes = [8, 8], strides = [1, 1]} : vector<8x32xf32> to vector<8x8xf32>
    %46 = arith.truncf %44 : vector<8x8xf32> to vector<8x8xbf16>
    %47 = arith.truncf %45 : vector<8x8xf32> to vector<8x8xbf16>
    %cst_30 = arith.constant dense<0.000000e+00> : vector<8x8xf32>
    %48 = tpu.matmul %46, %47, %cst_30 {dimension_numbers = #tpu.dot_dimension_numbers<[1], [1], [0], [0], [0, 0, 1, 0], [], []>} : vector<8x8xbf16>, vector<8x8xbf16>, vector<8x8xf32> -> vector<8x8xf32>
    %cst_31 = arith.constant 0.353553385 : f32
    %49 = vector.broadcast %cst_31 : f32 to vector<8x8xf32>
    %50 = arith.mulf %48, %49 : vector<8x8xf32>
    %cst_32 = arith.constant 0.000000e+00 : f32
    %51 = vector.broadcast %cst_32 : f32 to vector<8x8xf32>
    %52 = arith.cmpf oeq, %41, %51 : vector<8x8xf32>
    %cst_33 = arith.constant -1.000000e+09 : f32
    %53 = vector.broadcast %cst_33 : f32 to vector<8x8xf32>
    %54 = arith.select %52, %53, %50 : vector<8x8xi1>, vector<8x8xf32>
    %cst_34 = arith.constant dense<0xFF800000> : vector<8xf32>
    %55 = vector.multi_reduction <maximumf>, %54, %cst_34 [1] : vector<8x8xf32> to vector<8xf32>
    %56 = vector.shape_cast %55 : vector<8xf32> to vector<8x1xf32>
    %57 = vector.broadcast %56 : vector<8x1xf32> to vector<8x8xf32>
    %58 = arith.subf %54, %57 : vector<8x8xf32>
    %59 = math.exp %58 : vector<8x8xf32>
    %cst_35 = arith.constant dense<0.000000e+00> : vector<8xf32>
    %60 = vector.multi_reduction <add>, %59, %cst_35 [1] : vector<8x8xf32> to vector<8xf32>
    %61 = vector.shape_cast %60 : vector<8xf32> to vector<8x1xf32>
    %62 = tpu.reciprocal %61 {approx = true} : vector<8x1xf32> -> vector<8x1xf32>
    %63 = vector.broadcast %62 : vector<8x1xf32> to vector<8x8xf32>
    %64 = arith.mulf %59, %63 : vector<8x8xf32>
    %65 = vector.extract_strided_slice %39 {offsets = [0, 0], sizes = [8, 8], strides = [1, 1]} : vector<8x32xf32> to vector<8x8xf32>
    %66 = arith.truncf %64 : vector<8x8xf32> to vector<8x8xbf16>
    %67 = arith.truncf %65 : vector<8x8xf32> to vector<8x8xbf16>
    %cst_36 = arith.constant dense<0.000000e+00> : vector<8x8xf32>
    %68 = tpu.matmul %66, %67, %cst_36 {dimension_numbers = #tpu.dot_dimension_numbers<[1], [0], [0], [1], [0, 0, 1, 1], [], []>} : vector<8x8xbf16>, vector<8x8xbf16>, vector<8x8xf32> -> vector<8x8xf32>
    %69 = vector.extract_strided_slice %42 {offsets = [0, 0], sizes = [8, 32], strides = [1, 1]} : vector<32x32xf32> to vector<8x32xf32>
    %70 = arith.truncf %68 : vector<8x8xf32> to vector<8x8xbf16>
    %71 = arith.truncf %69 : vector<8x32xf32> to vector<8x32xbf16>
    %cst_37 = arith.constant dense<0.000000e+00> : vector<8x32xf32>
    %72 = tpu.matmul %70, %71, %cst_37 {dimension_numbers = #tpu.dot_dimension_numbers<[1], [0], [0], [1], [0, 0, 1, 1], [], []>} : vector<8x8xbf16>, vector<8x32xbf16>, vector<8x32xf32> -> vector<8x32xf32>
    %73 = vector.broadcast %43 : vector<1x32xf32> to vector<8x32xf32>
    %74 = arith.addf %73, %72 : vector<8x32xf32>
    %75 = vector.extract_strided_slice %31 {offsets = [0, 8], sizes = [8, 8], strides = [1, 1]} : vector<8x32xf32> to vector<8x8xf32>
    %76 = vector.extract_strided_slice %38 {offsets = [0, 8], sizes = [8, 8], strides = [1, 1]} : vector<8x32xf32> to vector<8x8xf32>
    %77 = arith.truncf %75 : vector<8x8xf32> to vector<8x8xbf16>
    %78 = arith.truncf %76 : vector<8x8xf32> to vector<8x8xbf16>
    %cst_38 = arith.constant dense<0.000000e+00> : vector<8x8xf32>
    %79 = tpu.matmul %77, %78, %cst_38 {dimension_numbers = #tpu.dot_dimension_numbers<[1], [1], [0], [0], [0, 0, 1, 0], [], []>} : vector<8x8xbf16>, vector<8x8xbf16>, vector<8x8xf32> -> vector<8x8xf32>
    %cst_39 = arith.constant 0.353553385 : f32
    %80 = vector.broadcast %cst_39 : f32 to vector<8x8xf32>
    %81 = arith.mulf %79, %80 : vector<8x8xf32>
    %cst_40 = arith.constant 0.000000e+00 : f32
    %82 = vector.broadcast %cst_40 : f32 to vector<8x8xf32>
    %83 = arith.cmpf oeq, %41, %82 : vector<8x8xf32>
    %cst_41 = arith.constant -1.000000e+09 : f32
    %84 = vector.broadcast %cst_41 : f32 to vector<8x8xf32>
    %85 = arith.select %83, %84, %81 : vector<8x8xi1>, vector<8x8xf32>
    %cst_42 = arith.constant dense<0xFF800000> : vector<8xf32>
    %86 = vector.multi_reduction <maximumf>, %85, %cst_42 [1] : vector<8x8xf32> to vector<8xf32>
    %87 = vector.shape_cast %86 : vector<8xf32> to vector<8x1xf32>
    %88 = vector.broadcast %87 : vector<8x1xf32> to vector<8x8xf32>
    %89 = arith.subf %85, %88 : vector<8x8xf32>
    %90 = math.exp %89 : vector<8x8xf32>
    %cst_43 = arith.constant dense<0.000000e+00> : vector<8xf32>
    %91 = vector.multi_reduction <add>, %90, %cst_43 [1] : vector<8x8xf32> to vector<8xf32>
    %92 = vector.shape_cast %91 : vector<8xf32> to vector<8x1xf32>
    %93 = tpu.reciprocal %92 {approx = true} : vector<8x1xf32> -> vector<8x1xf32>
    %94 = vector.broadcast %93 : vector<8x1xf32> to vector<8x8xf32>
    %95 = arith.mulf %90, %94 : vector<8x8xf32>
    %96 = vector.extract_strided_slice %39 {offsets = [0, 8], sizes = [8, 8], strides = [1, 1]} : vector<8x32xf32> to vector<8x8xf32>
    %97 = arith.truncf %95 : vector<8x8xf32> to vector<8x8xbf16>
    %98 = arith.truncf %96 : vector<8x8xf32> to vector<8x8xbf16>
    %cst_44 = arith.constant dense<0.000000e+00> : vector<8x8xf32>
    %99 = tpu.matmul %97, %98, %cst_44 {dimension_numbers = #tpu.dot_dimension_numbers<[1], [0], [0], [1], [0, 0, 1, 1], [], []>} : vector<8x8xbf16>, vector<8x8xbf16>, vector<8x8xf32> -> vector<8x8xf32>
    %100 = vector.extract_strided_slice %42 {offsets = [8, 0], sizes = [8, 32], strides = [1, 1]} : vector<32x32xf32> to vector<8x32xf32>
    %101 = arith.truncf %99 : vector<8x8xf32> to vector<8x8xbf16>
    %102 = arith.truncf %100 : vector<8x32xf32> to vector<8x32xbf16>
    %cst_45 = arith.constant dense<0.000000e+00> : vector<8x32xf32>
    %103 = tpu.matmul %101, %102, %cst_45 {dimension_numbers = #tpu.dot_dimension_numbers<[1], [0], [0], [1], [0, 0, 1, 1], [], []>} : vector<8x8xbf16>, vector<8x32xbf16>, vector<8x32xf32> -> vector<8x32xf32>
    %104 = arith.addf %74, %103 : vector<8x32xf32>
    %105 = vector.extract_strided_slice %31 {offsets = [0, 16], sizes = [8, 8], strides = [1, 1]} : vector<8x32xf32> to vector<8x8xf32>
    %106 = vector.extract_strided_slice %38 {offsets = [0, 16], sizes = [8, 8], strides = [1, 1]} : vector<8x32xf32> to vector<8x8xf32>
    %107 = arith.truncf %105 : vector<8x8xf32> to vector<8x8xbf16>
    %108 = arith.truncf %106 : vector<8x8xf32> to vector<8x8xbf16>
    %cst_46 = arith.constant dense<0.000000e+00> : vector<8x8xf32>
    %109 = tpu.matmul %107, %108, %cst_46 {dimension_numbers = #tpu.dot_dimension_numbers<[1], [1], [0], [0], [0, 0, 1, 0], [], []>} : vector<8x8xbf16>, vector<8x8xbf16>, vector<8x8xf32> -> vector<8x8xf32>
    %cst_47 = arith.constant 0.353553385 : f32
    %110 = vector.broadcast %cst_47 : f32 to vector<8x8xf32>
    %111 = arith.mulf %109, %110 : vector<8x8xf32>
    %cst_48 = arith.constant 0.000000e+00 : f32
    %112 = vector.broadcast %cst_48 : f32 to vector<8x8xf32>
    %113 = arith.cmpf oeq, %41, %112 : vector<8x8xf32>
    %cst_49 = arith.constant -1.000000e+09 : f32
    %114 = vector.broadcast %cst_49 : f32 to vector<8x8xf32>
    %115 = arith.select %113, %114, %111 : vector<8x8xi1>, vector<8x8xf32>
    %cst_50 = arith.constant dense<0xFF800000> : vector<8xf32>
    %116 = vector.multi_reduction <maximumf>, %115, %cst_50 [1] : vector<8x8xf32> to vector<8xf32>
    %117 = vector.shape_cast %116 : vector<8xf32> to vector<8x1xf32>
    %118 = vector.broadcast %117 : vector<8x1xf32> to vector<8x8xf32>
    %119 = arith.subf %115, %118 : vector<8x8xf32>
    %120 = math.exp %119 : vector<8x8xf32>
    %cst_51 = arith.constant dense<0.000000e+00> : vector<8xf32>
    %121 = vector.multi_reduction <add>, %120, %cst_51 [1] : vector<8x8xf32> to vector<8xf32>
    %122 = vector.shape_cast %121 : vector<8xf32> to vector<8x1xf32>
    %123 = tpu.reciprocal %122 {approx = true} : vector<8x1xf32> -> vector<8x1xf32>
    %124 = vector.broadcast %123 : vector<8x1xf32> to vector<8x8xf32>
    %125 = arith.mulf %120, %124 : vector<8x8xf32>
    %126 = vector.extract_strided_slice %39 {offsets = [0, 16], sizes = [8, 8], strides = [1, 1]} : vector<8x32xf32> to vector<8x8xf32>
    %127 = arith.truncf %125 : vector<8x8xf32> to vector<8x8xbf16>
    %128 = arith.truncf %126 : vector<8x8xf32> to vector<8x8xbf16>
    %cst_52 = arith.constant dense<0.000000e+00> : vector<8x8xf32>
    %129 = tpu.matmul %127, %128, %cst_52 {dimension_numbers = #tpu.dot_dimension_numbers<[1], [0], [0], [1], [0, 0, 1, 1], [], []>} : vector<8x8xbf16>, vector<8x8xbf16>, vector<8x8xf32> -> vector<8x8xf32>
    %130 = vector.extract_strided_slice %42 {offsets = [16, 0], sizes = [8, 32], strides = [1, 1]} : vector<32x32xf32> to vector<8x32xf32>
    %131 = arith.truncf %129 : vector<8x8xf32> to vector<8x8xbf16>
    %132 = arith.truncf %130 : vector<8x32xf32> to vector<8x32xbf16>
    %cst_53 = arith.constant dense<0.000000e+00> : vector<8x32xf32>
    %133 = tpu.matmul %131, %132, %cst_53 {dimension_numbers = #tpu.dot_dimension_numbers<[1], [0], [0], [1], [0, 0, 1, 1], [], []>} : vector<8x8xbf16>, vector<8x32xbf16>, vector<8x32xf32> -> vector<8x32xf32>
    %134 = arith.addf %104, %133 : vector<8x32xf32>
    %135 = vector.extract_strided_slice %31 {offsets = [0, 24], sizes = [8, 8], strides = [1, 1]} : vector<8x32xf32> to vector<8x8xf32>
    %136 = vector.extract_strided_slice %38 {offsets = [0, 24], sizes = [8, 8], strides = [1, 1]} : vector<8x32xf32> to vector<8x8xf32>
    %137 = arith.truncf %135 : vector<8x8xf32> to vector<8x8xbf16>
    %138 = arith.truncf %136 : vector<8x8xf32> to vector<8x8xbf16>
    %cst_54 = arith.constant dense<0.000000e+00> : vector<8x8xf32>
    %139 = tpu.matmul %137, %138, %cst_54 {dimension_numbers = #tpu.dot_dimension_numbers<[1], [1], [0], [0], [0, 0, 1, 0], [], []>} : vector<8x8xbf16>, vector<8x8xbf16>, vector<8x8xf32> -> vector<8x8xf32>
    %cst_55 = arith.constant 0.353553385 : f32
    %140 = vector.broadcast %cst_55 : f32 to vector<8x8xf32>
    %141 = arith.mulf %139, %140 : vector<8x8xf32>
    %cst_56 = arith.constant 0.000000e+00 : f32
    %142 = vector.broadcast %cst_56 : f32 to vector<8x8xf32>
    %143 = arith.cmpf oeq, %41, %142 : vector<8x8xf32>
    %cst_57 = arith.constant -1.000000e+09 : f32
    %144 = vector.broadcast %cst_57 : f32 to vector<8x8xf32>
    %145 = arith.select %143, %144, %141 : vector<8x8xi1>, vector<8x8xf32>
    %cst_58 = arith.constant dense<0xFF800000> : vector<8xf32>
    %146 = vector.multi_reduction <maximumf>, %145, %cst_58 [1] : vector<8x8xf32> to vector<8xf32>
    %147 = vector.shape_cast %146 : vector<8xf32> to vector<8x1xf32>
    %148 = vector.broadcast %147 : vector<8x1xf32> to vector<8x8xf32>
    %149 = arith.subf %145, %148 : vector<8x8xf32>
    %150 = math.exp %149 : vector<8x8xf32>
    %cst_59 = arith.constant dense<0.000000e+00> : vector<8xf32>
    %151 = vector.multi_reduction <add>, %150, %cst_59 [1] : vector<8x8xf32> to vector<8xf32>
    %152 = vector.shape_cast %151 : vector<8xf32> to vector<8x1xf32>
    %153 = tpu.reciprocal %152 {approx = true} : vector<8x1xf32> -> vector<8x1xf32>
    %154 = vector.broadcast %153 : vector<8x1xf32> to vector<8x8xf32>
    %155 = arith.mulf %150, %154 : vector<8x8xf32>
    %156 = vector.extract_strided_slice %39 {offsets = [0, 24], sizes = [8, 8], strides = [1, 1]} : vector<8x32xf32> to vector<8x8xf32>
    %157 = arith.truncf %155 : vector<8x8xf32> to vector<8x8xbf16>
    %158 = arith.truncf %156 : vector<8x8xf32> to vector<8x8xbf16>
    %cst_60 = arith.constant dense<0.000000e+00> : vector<8x8xf32>
    %159 = tpu.matmul %157, %158, %cst_60 {dimension_numbers = #tpu.dot_dimension_numbers<[1], [0], [0], [1], [0, 0, 1, 1], [], []>} : vector<8x8xbf16>, vector<8x8xbf16>, vector<8x8xf32> -> vector<8x8xf32>
    %160 = vector.extract_strided_slice %42 {offsets = [24, 0], sizes = [8, 32], strides = [1, 1]} : vector<32x32xf32> to vector<8x32xf32>
    %161 = arith.truncf %159 : vector<8x8xf32> to vector<8x8xbf16>
    %162 = arith.truncf %160 : vector<8x32xf32> to vector<8x32xbf16>
    %cst_61 = arith.constant dense<0.000000e+00> : vector<8x32xf32>
    %163 = tpu.matmul %161, %162, %cst_61 {dimension_numbers = #tpu.dot_dimension_numbers<[1], [0], [0], [1], [0, 0, 1, 1], [], []>} : vector<8x8xbf16>, vector<8x32xbf16>, vector<8x32xf32> -> vector<8x32xf32>
    %164 = arith.addf %134, %163 : vector<8x32xf32>
    %165 = arith.addf %1, %164 : vector<8x32xf32>
    %c0_62 = arith.constant 0 : index
    %c0_63 = arith.constant 0 : index
    %c0_64 = arith.constant 0 : index
    %166 = vector.load %arg12[%c0_62, %c0_63, %c0_64] : memref<1x8x32xf32, #tpu.memory_space<vmem>>, vector<1x8x32xf32>
    %167 = vector.shape_cast %166 : vector<1x8x32xf32> to vector<8x32xf32>
    %168 = vector.shape_cast %165 : vector<8x32xf32> to vector<1x8x32xf32>
    tpu.vector_store %arg12[%c0_62, %c0_63, %c0_64], %168 {strides = array<i32>} : memref<1x8x32xf32, #tpu.memory_space<vmem>>, vector<1x8x32xf32>,
    return
  }
  func.func @transform_0(%arg0: i32) -> (i32, i32, i32) {
    %c0_i32 = arith.constant 0 : i32
    %c0_i32_0 = arith.constant 0 : i32
    %c0_i32_1 = arith.constant 0 : i32
    return %arg0, %c0_i32, %c0_i32_0 : i32, i32, i32
  }
  func.func @transform_1(%arg0: i32) -> (i32, i32, i32) {
    %c0_i32 = arith.constant 0 : i32
    %c0_i32_0 = arith.constant 0 : i32
    %c0_i32_1 = arith.constant 0 : i32
    return %arg0, %c0_i32, %c0_i32_0 : i32, i32, i32
  }
  func.func @transform_2(%arg0: i32) -> (i32, i32, i32) {
    %c0_i32 = arith.constant 0 : i32
    %c0_i32_0 = arith.constant 0 : i32
    %c0_i32_1 = arith.constant 0 : i32
    return %arg0, %c0_i32, %c0_i32_0 : i32, i32, i32
  }
  func.func @transform_3(%arg0: i32) -> (i32, i32) {
    %c0_i32 = arith.constant 0 : i32
    %c0_i32_0 = arith.constant 0 : i32
    %c0_i32_1 = arith.constant 0 : i32
    return %c0_i32, %c0_i32_0 : i32, i32
  }
  func.func @transform_4(%arg0: i32) -> (i32, i32) {
    %c0_i32 = arith.constant 0 : i32
    %c0_i32_0 = arith.constant 0 : i32
    %c0_i32_1 = arith.constant 0 : i32
    return %c0_i32, %c0_i32_0 : i32, i32
  }
  func.func @transform_5(%arg0: i32) -> (i32, i32) {
    %c0_i32 = arith.constant 0 : i32
    %c0_i32_0 = arith.constant 0 : i32
    %c0_i32_1 = arith.constant 0 : i32
    return %c0_i32, %c0_i32_0 : i32, i32
  }
  func.func @transform_6(%arg0: i32) -> (i32, i32) {
    %c0_i32 = arith.constant 0 : i32
    %c0_i32_0 = arith.constant 0 : i32
    %c0_i32_1 = arith.constant 0 : i32
    return %c0_i32, %c0_i32_0 : i32, i32
  }
  func.func @transform_7(%arg0: i32) -> (i32, i32) {
    %c0_i32 = arith.constant 0 : i32
    %c0_i32_0 = arith.constant 0 : i32
    %c0_i32_1 = arith.constant 0 : i32
    return %c0_i32, %c0_i32_0 : i32, i32
  }
  func.func @transform_8(%arg0: i32) -> (i32, i32) {
    %c0_i32 = arith.constant 0 : i32
    %c0_i32_0 = arith.constant 0 : i32
    %c0_i32_1 = arith.constant 0 : i32
    return %c0_i32, %c0_i32_0 : i32, i32
  }
  func.func @transform_9(%arg0: i32) -> (i32, i32) {
    %c0_i32 = arith.constant 0 : i32
    %c0_i32_0 = arith.constant 0 : i32
    %c0_i32_1 = arith.constant 0 : i32
    return %c0_i32, %c0_i32_0 : i32, i32
  }
  func.func @transform_10(%arg0: i32) -> (i32, i32) {
    %c0_i32 = arith.constant 0 : i32
    %c0_i32_0 = arith.constant 0 : i32
    %c0_i32_1 = arith.constant 0 : i32
    return %c0_i32, %c0_i32_0 : i32, i32
  }
  func.func @transform_11(%arg0: i32) -> (i32, i32, i32) {
    %c0_i32 = arith.constant 0 : i32
    %c0_i32_0 = arith.constant 0 : i32
    %c0_i32_1 = arith.constant 0 : i32
    return %arg0, %c0_i32, %c0_i32_0 : i32, i32, i32
  }
}

module attributes {stable_mosaic.version = 11 : i64} {
  func.func @_upsample_pe_kernel(%arg0: i32, %arg1: memref<1x8x16xf32, #tpu.memory_space<vmem>>, %arg2: memref<16x32xbf16, #tpu.memory_space<vmem>>, %arg3: memref<8x32xf32, #tpu.memory_space<vmem>>, %arg4: memref<1x8x32xf32, #tpu.memory_space<vmem>>) attributes {dimension_semantics = [#tpu.dimension_semantics<parallel>], iteration_bounds = array<i64: 2>, scalar_prefetch = 0 : i64, scratch_operands = 0 : i64, tpu.core_type = #tpu.core_type<tc>, window_params = [{transform_indices = @transform_0, window_bounds = array<i64: 1, 8, 16>}, {pipeline_mode = #tpu.pipeline_mode<synchronous>, transform_indices = @transform_1, window_bounds = array<i64: 16, 32>}, {pipeline_mode = #tpu.pipeline_mode<synchronous>, transform_indices = @transform_2, window_bounds = array<i64: 8, 32>}, {transform_indices = @transform_3, window_bounds = array<i64: 1, 8, 32>}]} {
    %c0 = arith.constant 0 : index
    %c0_0 = arith.constant 0 : index
    %c0_1 = arith.constant 0 : index
    %0 = vector.load %arg1[%c0, %c0_0, %c0_1] : memref<1x8x16xf32, #tpu.memory_space<vmem>>, vector<1x8x16xf32>
    %1 = vector.shape_cast %0 : vector<1x8x16xf32> to vector<8x16xf32>
    %c0_2 = arith.constant 0 : index
    %c0_3 = arith.constant 0 : index
    %2 = vector.load %arg2[%c0_2, %c0_3] : memref<16x32xbf16, #tpu.memory_space<vmem>>, vector<16x32xbf16>
    %3 = arith.truncf %1 : vector<8x16xf32> to vector<8x16xbf16>
    %cst = arith.constant dense<0.000000e+00> : vector<8x32xf32>
    %4 = tpu.matmul %3, %2, %cst {dimension_numbers = #tpu.dot_dimension_numbers<[1], [0], [0], [1], [0, 0, 1, 1], [], []>} : vector<8x16xbf16>, vector<16x32xbf16>, vector<8x32xf32> -> vector<8x32xf32>
    %cst_4 = arith.constant 5.65685415 : f32
    %5 = vector.broadcast %cst_4 : f32 to vector<8x32xf32>
    %6 = arith.mulf %4, %5 : vector<8x32xf32>
    %c0_5 = arith.constant 0 : index
    %c0_6 = arith.constant 0 : index
    %7 = vector.load %arg3[%c0_5, %c0_6] : memref<8x32xf32, #tpu.memory_space<vmem>>, vector<8x32xf32>
    %8 = arith.addf %6, %7 : vector<8x32xf32>
    %c0_7 = arith.constant 0 : index
    %c0_8 = arith.constant 0 : index
    %c0_9 = arith.constant 0 : index
    %9 = vector.load %arg4[%c0_7, %c0_8, %c0_9] : memref<1x8x32xf32, #tpu.memory_space<vmem>>, vector<1x8x32xf32>
    %10 = vector.shape_cast %9 : vector<1x8x32xf32> to vector<8x32xf32>
    %11 = vector.shape_cast %8 : vector<8x32xf32> to vector<1x8x32xf32>
    tpu.vector_store %arg4[%c0_7, %c0_8, %c0_9], %11 {strides = array<i32>} : memref<1x8x32xf32, #tpu.memory_space<vmem>>, vector<1x8x32xf32>,
    return
  }
  func.func @transform_0(%arg0: i32) -> (i32, i32, i32) {
    %c0_i32 = arith.constant 0 : i32
    %c0_i32_0 = arith.constant 0 : i32
    %c0_i32_1 = arith.constant 0 : i32
    return %arg0, %c0_i32, %c0_i32_0 : i32, i32, i32
  }
  func.func @transform_1(%arg0: i32) -> (i32, i32) {
    %c0_i32 = arith.constant 0 : i32
    %c0_i32_0 = arith.constant 0 : i32
    %c0_i32_1 = arith.constant 0 : i32
    return %c0_i32, %c0_i32_0 : i32, i32
  }
  func.func @transform_2(%arg0: i32) -> (i32, i32) {
    %c0_i32 = arith.constant 0 : i32
    %c0_i32_0 = arith.constant 0 : i32
    %c0_i32_1 = arith.constant 0 : i32
    return %c0_i32, %c0_i32_0 : i32, i32
  }
  func.func @transform_3(%arg0: i32) -> (i32, i32, i32) {
    %c0_i32 = arith.constant 0 : i32
    %c0_i32_0 = arith.constant 0 : i32
    %c0_i32_1 = arith.constant 0 : i32
    return %arg0, %c0_i32, %c0_i32_0 : i32, i32, i32
  }
}

module attributes {stable_mosaic.version = 11 : i64} {
  func.func @_self_attn_block_kernel(%arg0: i32, %arg1: memref<1x8x32xf32, #tpu.memory_space<vmem>>, %arg2: memref<1x8x8xf32, #tpu.memory_space<vmem>>, %arg3: memref<1x32xf32, #tpu.memory_space<vmem>>, %arg4: memref<1x32xf32, #tpu.memory_space<vmem>>, %arg5: memref<32x96xbf16, #tpu.memory_space<vmem>>, %arg6: memref<1x96xf32, #tpu.memory_space<vmem>>, %arg7: memref<32x32xf32, #tpu.memory_space<vmem>>, %arg8: memref<1x32xf32, #tpu.memory_space<vmem>>, %arg9: memref<1x8x32xf32, #tpu.memory_space<vmem>>) attributes {dimension_semantics = [#tpu.dimension_semantics<parallel>], iteration_bounds = array<i64: 2>, scalar_prefetch = 0 : i64, scratch_operands = 0 : i64, tpu.core_type = #tpu.core_type<tc>, window_params = [{transform_indices = @transform_0, window_bounds = array<i64: 1, 8, 32>}, {transform_indices = @transform_1, window_bounds = array<i64: 1, 8, 8>}, {pipeline_mode = #tpu.pipeline_mode<synchronous>, transform_indices = @transform_2, window_bounds = array<i64: 1, 32>}, {pipeline_mode = #tpu.pipeline_mode<synchronous>, transform_indices = @transform_3, window_bounds = array<i64: 1, 32>}, {pipeline_mode = #tpu.pipeline_mode<synchronous>, transform_indices = @transform_4, window_bounds = array<i64: 32, 96>}, {pipeline_mode = #tpu.pipeline_mode<synchronous>, transform_indices = @transform_5, window_bounds = array<i64: 1, 96>}, {pipeline_mode = #tpu.pipeline_mode<synchronous>, transform_indices = @transform_6, window_bounds = array<i64: 32, 32>}, {pipeline_mode = #tpu.pipeline_mode<synchronous>, transform_indices = @transform_7, window_bounds = array<i64: 1, 32>}, {transform_indices = @transform_8, window_bounds = array<i64: 1, 8, 32>}]} {
    %c0 = arith.constant 0 : index
    %c0_0 = arith.constant 0 : index
    %c0_1 = arith.constant 0 : index
    %0 = vector.load %arg1[%c0, %c0_0, %c0_1] : memref<1x8x32xf32, #tpu.memory_space<vmem>>, vector<1x8x32xf32>
    %1 = vector.shape_cast %0 : vector<1x8x32xf32> to vector<8x32xf32>
    %c0_2 = arith.constant 0 : index
    %c0_3 = arith.constant 0 : index
    %2 = vector.load %arg3[%c0_2, %c0_3] : memref<1x32xf32, #tpu.memory_space<vmem>>, vector<1x32xf32>
    %c0_4 = arith.constant 0 : index
    %c0_5 = arith.constant 0 : index
    %3 = vector.load %arg4[%c0_4, %c0_5] : memref<1x32xf32, #tpu.memory_space<vmem>>, vector<1x32xf32>
    %cst = arith.constant dense<0.000000e+00> : vector<8xf32>
    %4 = vector.multi_reduction <add>, %1, %cst [1] : vector<8x32xf32> to vector<8xf32>
    %5 = vector.shape_cast %4 : vector<8xf32> to vector<8x1xf32>
    %cst_6 = arith.constant 3.200000e+01 : f32
    %6 = vector.broadcast %cst_6 : f32 to vector<8x1xf32>
    %7 = arith.divf %5, %6 : vector<8x1xf32>
    %8 = vector.broadcast %7 : vector<8x1xf32> to vector<8x32xf32>
    %9 = arith.subf %1, %8 : vector<8x32xf32>
    %10 = arith.mulf %9, %9 : vector<8x32xf32>
    %cst_7 = arith.constant dense<0.000000e+00> : vector<8xf32>
    %11 = vector.multi_reduction <add>, %10, %cst_7 [1] : vector<8x32xf32> to vector<8xf32>
    %12 = vector.shape_cast %11 : vector<8xf32> to vector<8x1xf32>
    %cst_8 = arith.constant 0.0322580636 : f32
    %13 = vector.broadcast %cst_8 : f32 to vector<8x1xf32>
    %14 = arith.mulf %12, %13 : vector<8x1xf32>
    %15 = vector.broadcast %2 : vector<1x32xf32> to vector<8x32xf32>
    %16 = arith.mulf %15, %9 : vector<8x32xf32>
    %17 = math.sqrt %14 : vector<8x1xf32>
    %cst_9 = arith.constant 9.99999997E-7 : f32
    %18 = vector.broadcast %cst_9 : f32 to vector<8x1xf32>
    %19 = arith.addf %17, %18 : vector<8x1xf32>
    %20 = vector.broadcast %19 : vector<8x1xf32> to vector<8x32xf32>
    %21 = arith.divf %16, %20 : vector<8x32xf32>
    %22 = vector.broadcast %3 : vector<1x32xf32> to vector<8x32xf32>
    %23 = arith.addf %21, %22 : vector<8x32xf32>
    %c0_10 = arith.constant 0 : index
    %c0_11 = arith.constant 0 : index
    %24 = vector.load %arg5[%c0_10, %c0_11] : memref<32x96xbf16, #tpu.memory_space<vmem>>, vector<32x96xbf16>
    %25 = arith.truncf %23 : vector<8x32xf32> to vector<8x32xbf16>
    %cst_12 = arith.constant dense<0.000000e+00> : vector<8x96xf32>
    %26 = tpu.matmul %25, %24, %cst_12 {dimension_numbers = #tpu.dot_dimension_numbers<[1], [0], [0], [1], [0, 0, 1, 1], [], []>} : vector<8x32xbf16>, vector<32x96xbf16>, vector<8x96xf32> -> vector<8x96xf32>
    %c0_13 = arith.constant 0 : index
    %c0_14 = arith.constant 0 : index
    %27 = vector.load %arg6[%c0_13, %c0_14] : memref<1x96xf32, #tpu.memory_space<vmem>>, vector<1x96xf32>
    %28 = vector.broadcast %27 : vector<1x96xf32> to vector<8x96xf32>
    %29 = arith.addf %26, %28 : vector<8x96xf32>
    %30 = vector.extract_strided_slice %29 {offsets = [0, 0], sizes = [8, 32], strides = [1, 1]} : vector<8x96xf32> to vector<8x32xf32>
    %31 = vector.extract_strided_slice %29 {offsets = [0, 32], sizes = [8, 32], strides = [1, 1]} : vector<8x96xf32> to vector<8x32xf32>
    %32 = vector.extract_strided_slice %29 {offsets = [0, 64], sizes = [8, 32], strides = [1, 1]} : vector<8x96xf32> to vector<8x32xf32>
    %c0_15 = arith.constant 0 : index
    %c0_16 = arith.constant 0 : index
    %c0_17 = arith.constant 0 : index
    %33 = vector.load %arg2[%c0_15, %c0_16, %c0_17] : memref<1x8x8xf32, #tpu.memory_space<vmem>>, vector<1x8x8xf32>
    %34 = vector.shape_cast %33 : vector<1x8x8xf32> to vector<8x8xf32>
    %c0_18 = arith.constant 0 : index
    %c0_19 = arith.constant 0 : index
    %35 = vector.load %arg7[%c0_18, %c0_19] : memref<32x32xf32, #tpu.memory_space<vmem>>, vector<32x32xf32>
    %c0_20 = arith.constant 0 : index
    %c0_21 = arith.constant 0 : index
    %36 = vector.load %arg8[%c0_20, %c0_21] : memref<1x32xf32, #tpu.memory_space<vmem>>, vector<1x32xf32>
    %37 = vector.extract_strided_slice %30 {offsets = [0, 0], sizes = [8, 8], strides = [1, 1]} : vector<8x32xf32> to vector<8x8xf32>
    %38 = vector.extract_strided_slice %31 {offsets = [0, 0], sizes = [8, 8], strides = [1, 1]} : vector<8x32xf32> to vector<8x8xf32>
    %39 = arith.truncf %37 : vector<8x8xf32> to vector<8x8xbf16>
    %40 = arith.truncf %38 : vector<8x8xf32> to vector<8x8xbf16>
    %cst_22 = arith.constant dense<0.000000e+00> : vector<8x8xf32>
    %41 = tpu.matmul %39, %40, %cst_22 {dimension_numbers = #tpu.dot_dimension_numbers<[1], [1], [0], [0], [0, 0, 1, 0], [], []>} : vector<8x8xbf16>, vector<8x8xbf16>, vector<8x8xf32> -> vector<8x8xf32>
    %cst_23 = arith.constant 0.353553385 : f32
    %42 = vector.broadcast %cst_23 : f32 to vector<8x8xf32>
    %43 = arith.mulf %41, %42 : vector<8x8xf32>
    %cst_24 = arith.constant 0.000000e+00 : f32
    %44 = vector.broadcast %cst_24 : f32 to vector<8x8xf32>
    %45 = arith.cmpf oeq, %34, %44 : vector<8x8xf32>
    %cst_25 = arith.constant -1.000000e+09 : f32
    %46 = vector.broadcast %cst_25 : f32 to vector<8x8xf32>
    %47 = arith.select %45, %46, %43 : vector<8x8xi1>, vector<8x8xf32>
    %cst_26 = arith.constant dense<0xFF800000> : vector<8xf32>
    %48 = vector.multi_reduction <maximumf>, %47, %cst_26 [1] : vector<8x8xf32> to vector<8xf32>
    %49 = vector.shape_cast %48 : vector<8xf32> to vector<8x1xf32>
    %50 = vector.broadcast %49 : vector<8x1xf32> to vector<8x8xf32>
    %51 = arith.subf %47, %50 : vector<8x8xf32>
    %52 = math.exp %51 : vector<8x8xf32>
    %cst_27 = arith.constant dense<0.000000e+00> : vector<8xf32>
    %53 = vector.multi_reduction <add>, %52, %cst_27 [1] : vector<8x8xf32> to vector<8xf32>
    %54 = vector.shape_cast %53 : vector<8xf32> to vector<8x1xf32>
    %55 = tpu.reciprocal %54 {approx = true} : vector<8x1xf32> -> vector<8x1xf32>
    %56 = vector.broadcast %55 : vector<8x1xf32> to vector<8x8xf32>
    %57 = arith.mulf %52, %56 : vector<8x8xf32>
    %58 = vector.extract_strided_slice %32 {offsets = [0, 0], sizes = [8, 8], strides = [1, 1]} : vector<8x32xf32> to vector<8x8xf32>
    %59 = arith.truncf %57 : vector<8x8xf32> to vector<8x8xbf16>
    %60 = arith.truncf %58 : vector<8x8xf32> to vector<8x8xbf16>
    %cst_28 = arith.constant dense<0.000000e+00> : vector<8x8xf32>
    %61 = tpu.matmul %59, %60, %cst_28 {dimension_numbers = #tpu.dot_dimension_numbers<[1], [0], [0], [1], [0, 0, 1, 1], [], []>} : vector<8x8xbf16>, vector<8x8xbf16>, vector<8x8xf32> -> vector<8x8xf32>
    %62 = vector.extract_strided_slice %35 {offsets = [0, 0], sizes = [8, 32], strides = [1, 1]} : vector<32x32xf32> to vector<8x32xf32>
    %63 = arith.truncf %61 : vector<8x8xf32> to vector<8x8xbf16>
    %64 = arith.truncf %62 : vector<8x32xf32> to vector<8x32xbf16>
    %cst_29 = arith.constant dense<0.000000e+00> : vector<8x32xf32>
    %65 = tpu.matmul %63, %64, %cst_29 {dimension_numbers = #tpu.dot_dimension_numbers<[1], [0], [0], [1], [0, 0, 1, 1], [], []>} : vector<8x8xbf16>, vector<8x32xbf16>, vector<8x32xf32> -> vector<8x32xf32>
    %66 = vector.broadcast %36 : vector<1x32xf32> to vector<8x32xf32>
    %67 = arith.addf %66, %65 : vector<8x32xf32>
    %68 = vector.extract_strided_slice %30 {offsets = [0, 8], sizes = [8, 8], strides = [1, 1]} : vector<8x32xf32> to vector<8x8xf32>
    %69 = vector.extract_strided_slice %31 {offsets = [0, 8], sizes = [8, 8], strides = [1, 1]} : vector<8x32xf32> to vector<8x8xf32>
    %70 = arith.truncf %68 : vector<8x8xf32> to vector<8x8xbf16>
    %71 = arith.truncf %69 : vector<8x8xf32> to vector<8x8xbf16>
    %cst_30 = arith.constant dense<0.000000e+00> : vector<8x8xf32>
    %72 = tpu.matmul %70, %71, %cst_30 {dimension_numbers = #tpu.dot_dimension_numbers<[1], [1], [0], [0], [0, 0, 1, 0], [], []>} : vector<8x8xbf16>, vector<8x8xbf16>, vector<8x8xf32> -> vector<8x8xf32>
    %cst_31 = arith.constant 0.353553385 : f32
    %73 = vector.broadcast %cst_31 : f32 to vector<8x8xf32>
    %74 = arith.mulf %72, %73 : vector<8x8xf32>
    %cst_32 = arith.constant 0.000000e+00 : f32
    %75 = vector.broadcast %cst_32 : f32 to vector<8x8xf32>
    %76 = arith.cmpf oeq, %34, %75 : vector<8x8xf32>
    %cst_33 = arith.constant -1.000000e+09 : f32
    %77 = vector.broadcast %cst_33 : f32 to vector<8x8xf32>
    %78 = arith.select %76, %77, %74 : vector<8x8xi1>, vector<8x8xf32>
    %cst_34 = arith.constant dense<0xFF800000> : vector<8xf32>
    %79 = vector.multi_reduction <maximumf>, %78, %cst_34 [1] : vector<8x8xf32> to vector<8xf32>
    %80 = vector.shape_cast %79 : vector<8xf32> to vector<8x1xf32>
    %81 = vector.broadcast %80 : vector<8x1xf32> to vector<8x8xf32>
    %82 = arith.subf %78, %81 : vector<8x8xf32>
    %83 = math.exp %82 : vector<8x8xf32>
    %cst_35 = arith.constant dense<0.000000e+00> : vector<8xf32>
    %84 = vector.multi_reduction <add>, %83, %cst_35 [1] : vector<8x8xf32> to vector<8xf32>
    %85 = vector.shape_cast %84 : vector<8xf32> to vector<8x1xf32>
    %86 = tpu.reciprocal %85 {approx = true} : vector<8x1xf32> -> vector<8x1xf32>
    %87 = vector.broadcast %86 : vector<8x1xf32> to vector<8x8xf32>
    %88 = arith.mulf %83, %87 : vector<8x8xf32>
    %89 = vector.extract_strided_slice %32 {offsets = [0, 8], sizes = [8, 8], strides = [1, 1]} : vector<8x32xf32> to vector<8x8xf32>
    %90 = arith.truncf %88 : vector<8x8xf32> to vector<8x8xbf16>
    %91 = arith.truncf %89 : vector<8x8xf32> to vector<8x8xbf16>
    %cst_36 = arith.constant dense<0.000000e+00> : vector<8x8xf32>
    %92 = tpu.matmul %90, %91, %cst_36 {dimension_numbers = #tpu.dot_dimension_numbers<[1], [0], [0], [1], [0, 0, 1, 1], [], []>} : vector<8x8xbf16>, vector<8x8xbf16>, vector<8x8xf32> -> vector<8x8xf32>
    %93 = vector.extract_strided_slice %35 {offsets = [8, 0], sizes = [8, 32], strides = [1, 1]} : vector<32x32xf32> to vector<8x32xf32>
    %94 = arith.truncf %92 : vector<8x8xf32> to vector<8x8xbf16>
    %95 = arith.truncf %93 : vector<8x32xf32> to vector<8x32xbf16>
    %cst_37 = arith.constant dense<0.000000e+00> : vector<8x32xf32>
    %96 = tpu.matmul %94, %95, %cst_37 {dimension_numbers = #tpu.dot_dimension_numbers<[1], [0], [0], [1], [0, 0, 1, 1], [], []>} : vector<8x8xbf16>, vector<8x32xbf16>, vector<8x32xf32> -> vector<8x32xf32>
    %97 = arith.addf %67, %96 : vector<8x32xf32>
    %98 = vector.extract_strided_slice %30 {offsets = [0, 16], sizes = [8, 8], strides = [1, 1]} : vector<8x32xf32> to vector<8x8xf32>
    %99 = vector.extract_strided_slice %31 {offsets = [0, 16], sizes = [8, 8], strides = [1, 1]} : vector<8x32xf32> to vector<8x8xf32>
    %100 = arith.truncf %98 : vector<8x8xf32> to vector<8x8xbf16>
    %101 = arith.truncf %99 : vector<8x8xf32> to vector<8x8xbf16>
    %cst_38 = arith.constant dense<0.000000e+00> : vector<8x8xf32>
    %102 = tpu.matmul %100, %101, %cst_38 {dimension_numbers = #tpu.dot_dimension_numbers<[1], [1], [0], [0], [0, 0, 1, 0], [], []>} : vector<8x8xbf16>, vector<8x8xbf16>, vector<8x8xf32> -> vector<8x8xf32>
    %cst_39 = arith.constant 0.353553385 : f32
    %103 = vector.broadcast %cst_39 : f32 to vector<8x8xf32>
    %104 = arith.mulf %102, %103 : vector<8x8xf32>
    %cst_40 = arith.constant 0.000000e+00 : f32
    %105 = vector.broadcast %cst_40 : f32 to vector<8x8xf32>
    %106 = arith.cmpf oeq, %34, %105 : vector<8x8xf32>
    %cst_41 = arith.constant -1.000000e+09 : f32
    %107 = vector.broadcast %cst_41 : f32 to vector<8x8xf32>
    %108 = arith.select %106, %107, %104 : vector<8x8xi1>, vector<8x8xf32>
    %cst_42 = arith.constant dense<0xFF800000> : vector<8xf32>
    %109 = vector.multi_reduction <maximumf>, %108, %cst_42 [1] : vector<8x8xf32> to vector<8xf32>
    %110 = vector.shape_cast %109 : vector<8xf32> to vector<8x1xf32>
    %111 = vector.broadcast %110 : vector<8x1xf32> to vector<8x8xf32>
    %112 = arith.subf %108, %111 : vector<8x8xf32>
    %113 = math.exp %112 : vector<8x8xf32>
    %cst_43 = arith.constant dense<0.000000e+00> : vector<8xf32>
    %114 = vector.multi_reduction <add>, %113, %cst_43 [1] : vector<8x8xf32> to vector<8xf32>
    %115 = vector.shape_cast %114 : vector<8xf32> to vector<8x1xf32>
    %116 = tpu.reciprocal %115 {approx = true} : vector<8x1xf32> -> vector<8x1xf32>
    %117 = vector.broadcast %116 : vector<8x1xf32> to vector<8x8xf32>
    %118 = arith.mulf %113, %117 : vector<8x8xf32>
    %119 = vector.extract_strided_slice %32 {offsets = [0, 16], sizes = [8, 8], strides = [1, 1]} : vector<8x32xf32> to vector<8x8xf32>
    %120 = arith.truncf %118 : vector<8x8xf32> to vector<8x8xbf16>
    %121 = arith.truncf %119 : vector<8x8xf32> to vector<8x8xbf16>
    %cst_44 = arith.constant dense<0.000000e+00> : vector<8x8xf32>
    %122 = tpu.matmul %120, %121, %cst_44 {dimension_numbers = #tpu.dot_dimension_numbers<[1], [0], [0], [1], [0, 0, 1, 1], [], []>} : vector<8x8xbf16>, vector<8x8xbf16>, vector<8x8xf32> -> vector<8x8xf32>
    %123 = vector.extract_strided_slice %35 {offsets = [16, 0], sizes = [8, 32], strides = [1, 1]} : vector<32x32xf32> to vector<8x32xf32>
    %124 = arith.truncf %122 : vector<8x8xf32> to vector<8x8xbf16>
    %125 = arith.truncf %123 : vector<8x32xf32> to vector<8x32xbf16>
    %cst_45 = arith.constant dense<0.000000e+00> : vector<8x32xf32>
    %126 = tpu.matmul %124, %125, %cst_45 {dimension_numbers = #tpu.dot_dimension_numbers<[1], [0], [0], [1], [0, 0, 1, 1], [], []>} : vector<8x8xbf16>, vector<8x32xbf16>, vector<8x32xf32> -> vector<8x32xf32>
    %127 = arith.addf %97, %126 : vector<8x32xf32>
    %128 = vector.extract_strided_slice %30 {offsets = [0, 24], sizes = [8, 8], strides = [1, 1]} : vector<8x32xf32> to vector<8x8xf32>
    %129 = vector.extract_strided_slice %31 {offsets = [0, 24], sizes = [8, 8], strides = [1, 1]} : vector<8x32xf32> to vector<8x8xf32>
    %130 = arith.truncf %128 : vector<8x8xf32> to vector<8x8xbf16>
    %131 = arith.truncf %129 : vector<8x8xf32> to vector<8x8xbf16>
    %cst_46 = arith.constant dense<0.000000e+00> : vector<8x8xf32>
    %132 = tpu.matmul %130, %131, %cst_46 {dimension_numbers = #tpu.dot_dimension_numbers<[1], [1], [0], [0], [0, 0, 1, 0], [], []>} : vector<8x8xbf16>, vector<8x8xbf16>, vector<8x8xf32> -> vector<8x8xf32>
    %cst_47 = arith.constant 0.353553385 : f32
    %133 = vector.broadcast %cst_47 : f32 to vector<8x8xf32>
    %134 = arith.mulf %132, %133 : vector<8x8xf32>
    %cst_48 = arith.constant 0.000000e+00 : f32
    %135 = vector.broadcast %cst_48 : f32 to vector<8x8xf32>
    %136 = arith.cmpf oeq, %34, %135 : vector<8x8xf32>
    %cst_49 = arith.constant -1.000000e+09 : f32
    %137 = vector.broadcast %cst_49 : f32 to vector<8x8xf32>
    %138 = arith.select %136, %137, %134 : vector<8x8xi1>, vector<8x8xf32>
    %cst_50 = arith.constant dense<0xFF800000> : vector<8xf32>
    %139 = vector.multi_reduction <maximumf>, %138, %cst_50 [1] : vector<8x8xf32> to vector<8xf32>
    %140 = vector.shape_cast %139 : vector<8xf32> to vector<8x1xf32>
    %141 = vector.broadcast %140 : vector<8x1xf32> to vector<8x8xf32>
    %142 = arith.subf %138, %141 : vector<8x8xf32>
    %143 = math.exp %142 : vector<8x8xf32>
    %cst_51 = arith.constant dense<0.000000e+00> : vector<8xf32>
    %144 = vector.multi_reduction <add>, %143, %cst_51 [1] : vector<8x8xf32> to vector<8xf32>
    %145 = vector.shape_cast %144 : vector<8xf32> to vector<8x1xf32>
    %146 = tpu.reciprocal %145 {approx = true} : vector<8x1xf32> -> vector<8x1xf32>
    %147 = vector.broadcast %146 : vector<8x1xf32> to vector<8x8xf32>
    %148 = arith.mulf %143, %147 : vector<8x8xf32>
    %149 = vector.extract_strided_slice %32 {offsets = [0, 24], sizes = [8, 8], strides = [1, 1]} : vector<8x32xf32> to vector<8x8xf32>
    %150 = arith.truncf %148 : vector<8x8xf32> to vector<8x8xbf16>
    %151 = arith.truncf %149 : vector<8x8xf32> to vector<8x8xbf16>
    %cst_52 = arith.constant dense<0.000000e+00> : vector<8x8xf32>
    %152 = tpu.matmul %150, %151, %cst_52 {dimension_numbers = #tpu.dot_dimension_numbers<[1], [0], [0], [1], [0, 0, 1, 1], [], []>} : vector<8x8xbf16>, vector<8x8xbf16>, vector<8x8xf32> -> vector<8x8xf32>
    %153 = vector.extract_strided_slice %35 {offsets = [24, 0], sizes = [8, 32], strides = [1, 1]} : vector<32x32xf32> to vector<8x32xf32>
    %154 = arith.truncf %152 : vector<8x8xf32> to vector<8x8xbf16>
    %155 = arith.truncf %153 : vector<8x32xf32> to vector<8x32xbf16>
    %cst_53 = arith.constant dense<0.000000e+00> : vector<8x32xf32>
    %156 = tpu.matmul %154, %155, %cst_53 {dimension_numbers = #tpu.dot_dimension_numbers<[1], [0], [0], [1], [0, 0, 1, 1], [], []>} : vector<8x8xbf16>, vector<8x32xbf16>, vector<8x32xf32> -> vector<8x32xf32>
    %157 = arith.addf %127, %156 : vector<8x32xf32>
    %158 = arith.addf %1, %157 : vector<8x32xf32>
    %c0_54 = arith.constant 0 : index
    %c0_55 = arith.constant 0 : index
    %c0_56 = arith.constant 0 : index
    %159 = vector.load %arg9[%c0_54, %c0_55, %c0_56] : memref<1x8x32xf32, #tpu.memory_space<vmem>>, vector<1x8x32xf32>
    %160 = vector.shape_cast %159 : vector<1x8x32xf32> to vector<8x32xf32>
    %161 = vector.shape_cast %158 : vector<8x32xf32> to vector<1x8x32xf32>
    tpu.vector_store %arg9[%c0_54, %c0_55, %c0_56], %161 {strides = array<i32>} : memref<1x8x32xf32, #tpu.memory_space<vmem>>, vector<1x8x32xf32>,
    return
  }
  func.func @transform_0(%arg0: i32) -> (i32, i32, i32) {
    %c0_i32 = arith.constant 0 : i32
    %c0_i32_0 = arith.constant 0 : i32
    %c0_i32_1 = arith.constant 0 : i32
    return %arg0, %c0_i32, %c0_i32_0 : i32, i32, i32
  }
  func.func @transform_1(%arg0: i32) -> (i32, i32, i32) {
    %c0_i32 = arith.constant 0 : i32
    %c0_i32_0 = arith.constant 0 : i32
    %c0_i32_1 = arith.constant 0 : i32
    return %arg0, %c0_i32, %c0_i32_0 : i32, i32, i32
  }
  func.func @transform_2(%arg0: i32) -> (i32, i32) {
    %c0_i32 = arith.constant 0 : i32
    %c0_i32_0 = arith.constant 0 : i32
    %c0_i32_1 = arith.constant 0 : i32
    return %c0_i32, %c0_i32_0 : i32, i32
  }
  func.func @transform_3(%arg0: i32) -> (i32, i32) {
    %c0_i32 = arith.constant 0 : i32
    %c0_i32_0 = arith.constant 0 : i32
    %c0_i32_1 = arith.constant 0 : i32
    return %c0_i32, %c0_i32_0 : i32, i32
  }
  func.func @transform_4(%arg0: i32) -> (i32, i32) {
    %c0_i32 = arith.constant 0 : i32
    %c0_i32_0 = arith.constant 0 : i32
    %c0_i32_1 = arith.constant 0 : i32
    return %c0_i32, %c0_i32_0 : i32, i32
  }
  func.func @transform_5(%arg0: i32) -> (i32, i32) {
    %c0_i32 = arith.constant 0 : i32
    %c0_i32_0 = arith.constant 0 : i32
    %c0_i32_1 = arith.constant 0 : i32
    return %c0_i32, %c0_i32_0 : i32, i32
  }
  func.func @transform_6(%arg0: i32) -> (i32, i32) {
    %c0_i32 = arith.constant 0 : i32
    %c0_i32_0 = arith.constant 0 : i32
    %c0_i32_1 = arith.constant 0 : i32
    return %c0_i32, %c0_i32_0 : i32, i32
  }
  func.func @transform_7(%arg0: i32) -> (i32, i32) {
    %c0_i32 = arith.constant 0 : i32
    %c0_i32_0 = arith.constant 0 : i32
    %c0_i32_1 = arith.constant 0 : i32
    return %c0_i32, %c0_i32_0 : i32, i32
  }
  func.func @transform_8(%arg0: i32) -> (i32, i32, i32) {
    %c0_i32 = arith.constant 0 : i32
    %c0_i32_0 = arith.constant 0 : i32
    %c0_i32_1 = arith.constant 0 : i32
    return %arg0, %c0_i32, %c0_i32_0 : i32, i32, i32
  }
}

module attributes {stable_mosaic.version = 11 : i64} {
  func.func @_ffn_block_kernel(%arg0: i32, %arg1: memref<16x32xf32, #tpu.memory_space<vmem>>, %arg2: memref<1x32xf32, #tpu.memory_space<vmem>>, %arg3: memref<1x32xf32, #tpu.memory_space<vmem>>, %arg4: memref<32x64xbf16, #tpu.memory_space<vmem>>, %arg5: memref<1x64xf32, #tpu.memory_space<vmem>>, %arg6: memref<64x32xbf16, #tpu.memory_space<vmem>>, %arg7: memref<1x32xf32, #tpu.memory_space<vmem>>, %arg8: memref<16x32xf32, #tpu.memory_space<vmem>>) attributes {dimension_semantics = [#tpu.dimension_semantics<parallel>], iteration_bounds = array<i64: 1>, scalar_prefetch = 0 : i64, scratch_operands = 0 : i64, tpu.core_type = #tpu.core_type<tc>, window_params = [{transform_indices = @transform_0, window_bounds = array<i64: 16, 32>}, {pipeline_mode = #tpu.pipeline_mode<synchronous>, transform_indices = @transform_1, window_bounds = array<i64: 1, 32>}, {pipeline_mode = #tpu.pipeline_mode<synchronous>, transform_indices = @transform_2, window_bounds = array<i64: 1, 32>}, {pipeline_mode = #tpu.pipeline_mode<synchronous>, transform_indices = @transform_3, window_bounds = array<i64: 32, 64>}, {pipeline_mode = #tpu.pipeline_mode<synchronous>, transform_indices = @transform_4, window_bounds = array<i64: 1, 64>}, {pipeline_mode = #tpu.pipeline_mode<synchronous>, transform_indices = @transform_5, window_bounds = array<i64: 64, 32>}, {pipeline_mode = #tpu.pipeline_mode<synchronous>, transform_indices = @transform_6, window_bounds = array<i64: 1, 32>}, {transform_indices = @transform_7, window_bounds = array<i64: 16, 32>}]} {
    %c0 = arith.constant 0 : index
    %c0_0 = arith.constant 0 : index
    %0 = vector.load %arg1[%c0, %c0_0] : memref<16x32xf32, #tpu.memory_space<vmem>>, vector<16x32xf32>
    %c0_1 = arith.constant 0 : index
    %c0_2 = arith.constant 0 : index
    %1 = vector.load %arg2[%c0_1, %c0_2] : memref<1x32xf32, #tpu.memory_space<vmem>>, vector<1x32xf32>
    %c0_3 = arith.constant 0 : index
    %c0_4 = arith.constant 0 : index
    %2 = vector.load %arg3[%c0_3, %c0_4] : memref<1x32xf32, #tpu.memory_space<vmem>>, vector<1x32xf32>
    %cst = arith.constant dense<0.000000e+00> : vector<16xf32>
    %3 = vector.multi_reduction <add>, %0, %cst [1] : vector<16x32xf32> to vector<16xf32>
    %4 = vector.shape_cast %3 : vector<16xf32> to vector<16x1xf32>
    %cst_5 = arith.constant 3.200000e+01 : f32
    %5 = vector.broadcast %cst_5 : f32 to vector<16x1xf32>
    %6 = arith.divf %4, %5 : vector<16x1xf32>
    %7 = vector.broadcast %6 : vector<16x1xf32> to vector<16x32xf32>
    %8 = arith.subf %0, %7 : vector<16x32xf32>
    %9 = arith.mulf %8, %8 : vector<16x32xf32>
    %cst_6 = arith.constant dense<0.000000e+00> : vector<16xf32>
    %10 = vector.multi_reduction <add>, %9, %cst_6 [1] : vector<16x32xf32> to vector<16xf32>
    %11 = vector.shape_cast %10 : vector<16xf32> to vector<16x1xf32>
    %cst_7 = arith.constant 0.0322580636 : f32
    %12 = vector.broadcast %cst_7 : f32 to vector<16x1xf32>
    %13 = arith.mulf %11, %12 : vector<16x1xf32>
    %14 = vector.broadcast %1 : vector<1x32xf32> to vector<16x32xf32>
    %15 = arith.mulf %14, %8 : vector<16x32xf32>
    %16 = math.sqrt %13 : vector<16x1xf32>
    %cst_8 = arith.constant 9.99999997E-7 : f32
    %17 = vector.broadcast %cst_8 : f32 to vector<16x1xf32>
    %18 = arith.addf %16, %17 : vector<16x1xf32>
    %19 = vector.broadcast %18 : vector<16x1xf32> to vector<16x32xf32>
    %20 = arith.divf %15, %19 : vector<16x32xf32>
    %21 = vector.broadcast %2 : vector<1x32xf32> to vector<16x32xf32>
    %22 = arith.addf %20, %21 : vector<16x32xf32>
    %c0_9 = arith.constant 0 : index
    %c0_10 = arith.constant 0 : index
    %23 = vector.load %arg4[%c0_9, %c0_10] : memref<32x64xbf16, #tpu.memory_space<vmem>>, vector<32x64xbf16>
    %24 = arith.truncf %22 : vector<16x32xf32> to vector<16x32xbf16>
    %cst_11 = arith.constant dense<0.000000e+00> : vector<16x64xf32>
    %25 = tpu.matmul %24, %23, %cst_11 {dimension_numbers = #tpu.dot_dimension_numbers<[1], [0], [0], [1], [0, 0, 1, 1], [], []>} : vector<16x32xbf16>, vector<32x64xbf16>, vector<16x64xf32> -> vector<16x64xf32>
    %c0_12 = arith.constant 0 : index
    %c0_13 = arith.constant 0 : index
    %26 = vector.load %arg5[%c0_12, %c0_13] : memref<1x64xf32, #tpu.memory_space<vmem>>, vector<1x64xf32>
    %27 = vector.broadcast %26 : vector<1x64xf32> to vector<16x64xf32>
    %28 = arith.addf %25, %27 : vector<16x64xf32>
    %cst_14 = arith.constant 0.000000e+00 : f32
    %29 = vector.broadcast %cst_14 : f32 to vector<16x64xf32>
    %30 = arith.maximumf %28, %29 : vector<16x64xf32>
    %c0_15 = arith.constant 0 : index
    %c0_16 = arith.constant 0 : index
    %31 = vector.load %arg6[%c0_15, %c0_16] : memref<64x32xbf16, #tpu.memory_space<vmem>>, vector<64x32xbf16>
    %32 = arith.truncf %30 : vector<16x64xf32> to vector<16x64xbf16>
    %cst_17 = arith.constant dense<0.000000e+00> : vector<16x32xf32>
    %33 = tpu.matmul %32, %31, %cst_17 {dimension_numbers = #tpu.dot_dimension_numbers<[1], [0], [0], [1], [0, 0, 1, 1], [], []>} : vector<16x64xbf16>, vector<64x32xbf16>, vector<16x32xf32> -> vector<16x32xf32>
    %34 = arith.addf %0, %33 : vector<16x32xf32>
    %c0_18 = arith.constant 0 : index
    %c0_19 = arith.constant 0 : index
    %35 = vector.load %arg7[%c0_18, %c0_19] : memref<1x32xf32, #tpu.memory_space<vmem>>, vector<1x32xf32>
    %36 = vector.broadcast %35 : vector<1x32xf32> to vector<16x32xf32>
    %37 = arith.addf %34, %36 : vector<16x32xf32>
    %c0_20 = arith.constant 0 : index
    %c0_21 = arith.constant 0 : index
    %38 = vector.load %arg8[%c0_20, %c0_21] : memref<16x32xf32, #tpu.memory_space<vmem>>, vector<16x32xf32>
    tpu.vector_store %arg8[%c0_20, %c0_21], %37 {strides = array<i32>} : memref<16x32xf32, #tpu.memory_space<vmem>>, vector<16x32xf32>,
    return
  }
  func.func @transform_0(%arg0: i32) -> (i32, i32) {
    %c0_i32 = arith.constant 0 : i32
    %c0_i32_0 = arith.constant 0 : i32
    return %arg0, %c0_i32 : i32, i32
  }
  func.func @transform_1(%arg0: i32) -> (i32, i32) {
    %c0_i32 = arith.constant 0 : i32
    %c0_i32_0 = arith.constant 0 : i32
    %c0_i32_1 = arith.constant 0 : i32
    return %c0_i32, %c0_i32_0 : i32, i32
  }
  func.func @transform_2(%arg0: i32) -> (i32, i32) {
    %c0_i32 = arith.constant 0 : i32
    %c0_i32_0 = arith.constant 0 : i32
    %c0_i32_1 = arith.constant 0 : i32
    return %c0_i32, %c0_i32_0 : i32, i32
  }
  func.func @transform_3(%arg0: i32) -> (i32, i32) {
    %c0_i32 = arith.constant 0 : i32
    %c0_i32_0 = arith.constant 0 : i32
    %c0_i32_1 = arith.constant 0 : i32
    return %c0_i32, %c0_i32_0 : i32, i32
  }
  func.func @transform_4(%arg0: i32) -> (i32, i32) {
    %c0_i32 = arith.constant 0 : i32
    %c0_i32_0 = arith.constant 0 : i32
    %c0_i32_1 = arith.constant 0 : i32
    return %c0_i32, %c0_i32_0 : i32, i32
  }
  func.func @transform_5(%arg0: i32) -> (i32, i32) {
    %c0_i32 = arith.constant 0 : i32
    %c0_i32_0 = arith.constant 0 : i32
    %c0_i32_1 = arith.constant 0 : i32
    return %c0_i32, %c0_i32_0 : i32, i32
  }
  func.func @transform_6(%arg0: i32) -> (i32, i32) {
    %c0_i32 = arith.constant 0 : i32
    %c0_i32_0 = arith.constant 0 : i32
    %c0_i32_1 = arith.constant 0 : i32
    return %c0_i32, %c0_i32_0 : i32, i32
  }
  func.func @transform_7(%arg0: i32) -> (i32, i32) {
    %c0_i32 = arith.constant 0 : i32
    %c0_i32_0 = arith.constant 0 : i32
    return %arg0, %c0_i32 : i32, i32
  }
}

module attributes {stable_mosaic.version = 11 : i64} {
  func.func @_layernorm_kernel(%arg0: i32, %arg1: memref<16x32xf32, #tpu.memory_space<vmem>>, %arg2: memref<1x32xf32, #tpu.memory_space<vmem>>, %arg3: memref<1x32xf32, #tpu.memory_space<vmem>>, %arg4: memref<16x32xf32, #tpu.memory_space<vmem>>) attributes {dimension_semantics = [#tpu.dimension_semantics<parallel>], iteration_bounds = array<i64: 1>, scalar_prefetch = 0 : i64, scratch_operands = 0 : i64, tpu.core_type = #tpu.core_type<tc>, window_params = [{transform_indices = @transform_0, window_bounds = array<i64: 16, 32>}, {pipeline_mode = #tpu.pipeline_mode<synchronous>, transform_indices = @transform_1, window_bounds = array<i64: 1, 32>}, {pipeline_mode = #tpu.pipeline_mode<synchronous>, transform_indices = @transform_2, window_bounds = array<i64: 1, 32>}, {transform_indices = @transform_3, window_bounds = array<i64: 16, 32>}]} {
    %c0 = arith.constant 0 : index
    %c0_0 = arith.constant 0 : index
    %0 = vector.load %arg1[%c0, %c0_0] : memref<16x32xf32, #tpu.memory_space<vmem>>, vector<16x32xf32>
    %cst = arith.constant dense<0.000000e+00> : vector<16xf32>
    %1 = vector.multi_reduction <add>, %0, %cst [1] : vector<16x32xf32> to vector<16xf32>
    %2 = vector.shape_cast %1 : vector<16xf32> to vector<16x1xf32>
    %cst_1 = arith.constant 3.200000e+01 : f32
    %3 = vector.broadcast %cst_1 : f32 to vector<16x1xf32>
    %4 = arith.divf %2, %3 : vector<16x1xf32>
    %5 = vector.broadcast %4 : vector<16x1xf32> to vector<16x32xf32>
    %6 = arith.subf %0, %5 : vector<16x32xf32>
    %7 = arith.mulf %6, %6 : vector<16x32xf32>
    %cst_2 = arith.constant dense<0.000000e+00> : vector<16xf32>
    %8 = vector.multi_reduction <add>, %7, %cst_2 [1] : vector<16x32xf32> to vector<16xf32>
    %9 = vector.shape_cast %8 : vector<16xf32> to vector<16x1xf32>
    %cst_3 = arith.constant 3.200000e+01 : f32
    %10 = vector.broadcast %cst_3 : f32 to vector<16x1xf32>
    %11 = arith.divf %9, %10 : vector<16x1xf32>
    %c0_4 = arith.constant 0 : index
    %c0_5 = arith.constant 0 : index
    %12 = vector.load %arg2[%c0_4, %c0_5] : memref<1x32xf32, #tpu.memory_space<vmem>>, vector<1x32xf32>
    %13 = vector.broadcast %12 : vector<1x32xf32> to vector<16x32xf32>
    %14 = arith.mulf %13, %6 : vector<16x32xf32>
    %cst_6 = arith.constant 9.99999974E-6 : f32
    %15 = vector.broadcast %cst_6 : f32 to vector<16x1xf32>
    %16 = arith.addf %11, %15 : vector<16x1xf32>
    %17 = math.rsqrt %16 : vector<16x1xf32>
    %18 = vector.broadcast %17 : vector<16x1xf32> to vector<16x32xf32>
    %19 = arith.mulf %14, %18 : vector<16x32xf32>
    %c0_7 = arith.constant 0 : index
    %c0_8 = arith.constant 0 : index
    %20 = vector.load %arg3[%c0_7, %c0_8] : memref<1x32xf32, #tpu.memory_space<vmem>>, vector<1x32xf32>
    %21 = vector.broadcast %20 : vector<1x32xf32> to vector<16x32xf32>
    %22 = arith.addf %19, %21 : vector<16x32xf32>
    %c0_9 = arith.constant 0 : index
    %c0_10 = arith.constant 0 : index
    %23 = vector.load %arg4[%c0_9, %c0_10] : memref<16x32xf32, #tpu.memory_space<vmem>>, vector<16x32xf32>
    tpu.vector_store %arg4[%c0_9, %c0_10], %22 {strides = array<i32>} : memref<16x32xf32, #tpu.memory_space<vmem>>, vector<16x32xf32>,
    return
  }
  func.func @transform_0(%arg0: i32) -> (i32, i32) {
    %c0_i32 = arith.constant 0 : i32
    %c0_i32_0 = arith.constant 0 : i32
    return %arg0, %c0_i32 : i32, i32
  }
  func.func @transform_1(%arg0: i32) -> (i32, i32) {
    %c0_i32 = arith.constant 0 : i32
    %c0_i32_0 = arith.constant 0 : i32
    %c0_i32_1 = arith.constant 0 : i32
    return %c0_i32, %c0_i32_0 : i32, i32
  }
  func.func @transform_2(%arg0: i32) -> (i32, i32) {
    %c0_i32 = arith.constant 0 : i32
    %c0_i32_0 = arith.constant 0 : i32
    %c0_i32_1 = arith.constant 0 : i32
    return %c0_i32, %c0_i32_0 : i32, i32
  }
  func.func @transform_3(%arg0: i32) -> (i32, i32) {
    %c0_i32 = arith.constant 0 : i32
    %c0_i32_0 = arith.constant 0 : i32
    return %arg0, %c0_i32 : i32, i32
  }
}

</mosaic_0001>

<bundles_post_ra>
// kernel: decoder_forward.8
= control target key start
LH: loop header
LB: loop body
LE: loop exit
PB: predicated region body
PF: predicated region fallthrough
CT: control target
= control target key end

     0   :  { %s339_s12 = smov 0   ;;  %s362_s0 = inlined_call_operand.vmem [shape: f32[2,8,16], index: 0, kind: input, shape index: {}]   ;;  %s363_s1 = inlined_call_operand.vmem [shape: bf16[16,32], index: 1, kind: input, shape index: {}]   ;;  %s364_s2 = inlined_call_operand.vmem [shape: f32[8,32], index: 2, kind: input, shape index: {}]   ;;  %s365_s3 = inlined_call_operand.vmem [shape: f32[2,8,32], index: 3, kind: output, shape index: {}]  }
   0x1 LB: > { %s279_s13 = sadd.s32 4294967295, %s315_s12   ;;  %p283_p0 = scmp.ge.s32.totalorder %s315_s12, 1  ;;  %s315_s12 = sphi %s339_s12, %s13_s12  }
   0x2   : > { %p136_p1 = scmp.lt.s32.totalorder %s315_s12, 3 }
   0x4   : > { %p137_p2 = pnand %p283_p0, %p136_p1 }
   0x5   : > { %v308_v0 = vld [vmem:[%s363_s1] sm:$0xff] (!%p137_p2)   ;;  %v317_v1 = vmov (!%p137_p2), 0.0   ;;  %p158_p3 = scmp.lt.s32.totalorder (!%p137_p2), %s279_s13, 1  ;;  %vm318_vm0 = vmmov (!%p137_p2), 0   ;;  %vm177_vm1 = vcmask (!%p137_p2), 130048   ;;  %vm224_vm2 = vcmask (!%p137_p2), 261120  }
   0x6   : > { %140 = sbr.rel (%p137_p2) target bundleno = 236 (0xec), region = 32  ;;  %292 = vmatprep.subr.bf16.mxu0 (!%p137_p2), %v317_v1  ;;  %294 = vmatprep.mubr.msk.bf16.mxu0 (!%p137_p2), %vm318_vm0, %v317_v1  ;;  %v222_v5 = vld [vmem:[%s364_s2] sm:$0xff] (!%p137_p2) }
   0x7   : > { %293 = vmatpush3.bf16.msra.mxu0 (!%p137_p2), %v308_v0 }
   0xd   : > { %s367_s13 = smov (!%p158_p3, %s279_s13), 1 }
   0xe   : > { %s284_s16 = sshll.u32 %s367_s13, 3 }
   0xf   : > { %s161_s19 = scalar_lea.vmem %s362_s0, %s284_s16  ;;  %s165_s24 = scalar_lea.vmem %s365_s3, %s284_s16 }
  0x10   : > { %v167_v2 = vld [vmem:[%s161_s19] sm:$0xff] }
  0x11   : > { %v170_v3 = vpack.c.bf16 %v167_v2, %v167_v2 }
  0x13   : > { %295 = vmatmul.mubr.msk.bf16.vlgmr.msra.gmra.mrb[0].mxu0 %vm177_vm1, %v170_v3 }
  0xe6   : > { %v215_v4 = vpop.f32.mrb[0].mxu0 }
  0xe7   : > { %v221_v6 = vmul.f32 5.656854, %v215_v4  ;;  %v296_v7 = vpop.f32.mrb[1].mxu0 }
  0xe8   : > { %v218_v8 = vpop.f32.mrb[2].mxu0 }
  0xe9   : > { %v223_v9 = vadd.f32 %v222_v5, %v221_v6  ;;  %v297_v10 = vpop.f32.mrb[3].mxu0 }
  0xeb   : > { %225 = vst.msk [vmem:[%s165_s24] sm:$0xff] %vm224_vm2, %v223_v9 }
  0xec PF: > { %s13_s12 = sadd.s32 1, %s315_s12  }
  0xed   : > { %p10_p4 = scmp.ge.s32.totalorder %s13_s12, 4  }
  0xef   :  { %12 = sbr.rel (!%p10_p4) target bundleno = 1 (0x1), region = 62 }

// kernel: decoder_forward.10
= control target key start
LH: loop header
LB: loop body
LE: loop exit
PB: predicated region body
PF: predicated region fallthrough
CT: control target
= control target key end

     0   :  { %s1599_s17 = smov 0   ;;  %s1780_s0 = inlined_call_operand.vmem [shape: f32[2,8,32], index: 0, kind: input, shape index: {}]   ;;  %s1781_s1 = inlined_call_operand.vmem [shape: f32[2,8,32], index: 1, kind: input, shape index: {}]   ;;  %s1782_s2 = inlined_call_operand.vmem [shape: f32[2,8,8], index: 2, kind: input, shape index: {}]   ;;  %s1783_s3 = inlined_call_operand.vmem [shape: f32[1,32], index: 3, kind: input, shape index: {}]   ;;  %s1784_s4 = inlined_call_operand.vmem [shape: f32[1,32], index: 4, kind: input, shape index: {}]   ;;  %s1785_s5 = inlined_call_operand.vmem [shape: bf16[32,32], index: 5, kind: input, shape index: {}]   ;;  %s1786_s6 = inlined_call_operand.vmem [shape: f32[1,32], index: 6, kind: input, shape index: {}]   ;;  %s1787_s7 = inlined_call_operand.vmem [shape: bf16[32,64], index: 7, kind: input, shape index: {}]   ;;  %s1788_s8 = inlined_call_operand.vmem [shape: f32[1,64], index: 8, kind: input, shape index: {}]   ;;  %s1789_s9 = inlined_call_operand.vmem [shape: f32[32,32], index: 9, kind: input, shape index: {}]   ;;  %s1790_s10 = inlined_call_operand.vmem [shape: f32[1,32], index: 10, kind: input, shape index: {}]   ;;  %s1791_s11 = inlined_call_operand.vmem [shape: f32[2,8,32], index: 11, kind: output, shape index: {}]  }
   0x1 LB: > { %s1329_s18 = sadd.s32 4294967295, %s1528_s17   ;;  %p1333_p0 = scmp.ge.s32.totalorder %s1528_s17, 1  ;;  %s1528_s17 = sphi %s1599_s17, %s21_s17  }
   0x2   : > { %p354_p1 = scmp.lt.s32.totalorder %s1528_s17, 3 }
   0x4   : > { %p355_p2 = pnand %p1333_p0, %p354_p1 }
   0x5   : > { %p400_p3 = scmp.lt.s32.totalorder (!%p355_p2), %s1329_s18, 1  ;;  %vm421_vm0 = vcmask (!%p355_p2), 261120   ;;  %v1498_v7 = vld [vmem:[%s1787_s7] sm:$0xff] (!%p355_p2)   ;;  %v1530_v8 = vmov (!%p355_p2), 0.0   ;;  %v1499_v10 = vld [vmem:[%s1787_s7 + $0x8] sm:$0xff] (!%p355_p2)   ;;  %vm1531_vm1 = vmmov (!%p355_p2), 0  }
   0x6   : > { %358 = sbr.rel (%p355_p2) target bundleno = 3140 (0xc44), region = 64  ;;  %1401 = vmatprep.subr.bf16.mxu1 (!%p355_p2), %v1530_v8  ;;  %1393 = vmatprep.subr.bf16.mxu0 (!%p355_p2), %v1530_v8  ;;  %v1500_v9 = vld [vmem:[%s1785_s5] sm:$0xff] (!%p355_p2)   ;;  %v1501_v12 = vld [vmem:[%s1785_s5 + $0x8] sm:$0xff] (!%p355_p2)   ;;  %vm599_vm4 = vcmask (!%p355_p2), 64512   ;;  %s1532_s23 = smov (!%p355_p2), 96   ;;  %vm667_vm5 = vcmask (!%p355_p2), 1043456  }
   0x7   : > { %1402 = vmatpush3.bf16.msra.mxu1 (!%p355_p2), %v1498_v7  ;;  %1405 = vmatprep.mubr.msk.bf16.mxu1 (!%p355_p2), %vm1531_vm1, %v1530_v8  ;;  %v1338_v22 = vld [vmem:[%s1783_s3] ss:$0 sm:$0xff] (!%p355_p2)  ;;  %s1533_s29 = smov (!%p355_p2), 120   ;;  %s1534_s13 = smov (!%p355_p2), 112  }
   0x8   : > { %1403 = vmatprep.subr.bf16.mxu1 (!%p355_p2), %v1530_v8  ;;  %1394 = vmatpush3.bf16.msra.mxu0 (!%p355_p2), %v1500_v9  ;;  %v1339_v25 = vld [vmem:[%s1784_s4] ss:$0 sm:$0xff] (!%p355_p2)  ;;  %s1535_s14 = smov (!%p355_p2), 88   ;;  %s1537_s20 = smov (!%p355_p2), 104  }
   0x9   : > { %1395 = vmatprep.subr.bf16.mxu0 (!%p355_p2), %v1530_v8  ;;  %1397 = vmatprep.mubr.msk.bf16.mxu0 (!%p355_p2), %vm1531_vm1, %v1530_v8  ;;  %v1344_v29 = vld [vmem:[%s1788_s8] ss:$0 sm:$0xff] (!%p355_p2)  ;;  %s1538_s25 = smov (!%p355_p2), 72  }
   0xa   : > { %v1340_v39 = vld [vmem:[%s1786_s6] ss:$0 sm:$0xff] (!%p355_p2) }
   0xb   : > { %1404 = vmatpush3.bf16.msra.mxu1 (!%p355_p2), %v1499_v10 }
   0xc   : > { %1396 = vmatpush3.bf16.msra.mxu0 (!%p355_p2), %v1501_v12  ;;  %1415 = vmatprep.subr.bf16.mxu1 (!%p355_p2), %v1530_v8 }
   0xd   : > { %s1793_s18 = smov (!%p400_p3, %s1329_s18), 1  ;;  %1409 = vmatprep.subr.bf16.mxu0 %v1530_v8 }
   0xe   : > { %s1607_s19 = sshll.u32 %s1793_s18, 3  ;;  %s1536_s18 = smov 80  }
   0xf   : > { %s403_s22 = scalar_lea.vmem %s1780_s0, %s1607_s19  ;;  %s407_s27 = scalar_lea.vmem %s1781_s1, %s1607_s19 }
  0x10   : > { %v1613_v0 = vld [vmem:[%s403_s22] sm:$0xff]  ;;  %s411_s28 = scalar_lea.vmem %s1782_s2, %s1607_s19  ;;  %s415_s30 = scalar_lea.vmem %s1791_s11, %s1607_s19 }
  0x11   : > { %v422_v1 = vsel %vm421_vm0, %v1613_v0, 0.0  ;;  %v418_v11 = vld [vmem:[%s407_s27] sm:$0xff] }
  0x12   : > { %423 = vadd.xlane.f32.xlu0 %v422_v1  ;;  %v528_v13 = vpack.c.bf16 %v418_v11, %v418_v11  ;;  %v1681_v46 = vld [vmem:[%s411_s28] sm:$0xff] }
  0x13   : > { %vm647_vm6 = vcmp.eq.f32.partialorder %v1681_v46, 0.0 }
  0x14   : > { %1406 = vmatmul.mubr.msk.bf16.vlgmr.msra.gmra.mrb[0].mxu1 %vm421_vm0, %v528_v13 }
  0x15   : > { %1417 = vmatprep.mubr.msk.bf16.mxu1 %vm1531_vm1, %v1530_v8 }
  0x9f   : > { %v424_v2 = vpop.xlane.xlu0 %423 }
  0xa0   : > { %v426_v3 = vmul.f32 0.03125, %v424_v2 }
  0xa2   : > { %v427_v4 = vsub.f32 %v1613_v0, %v426_v3  ;;  %v592_v3 = vld [vmem:[%s1789_s9] sm:$0xff] }
  0xa4   : > { %v428_v5 = vmul.f32 %v427_v4, %v427_v4  ;;  %v439_v23 = vmul.f32 %v1338_v22, %v427_v4  ;;  %v712_v4 = vpack.c.bf16 %v592_v3, %v592_v3 }
  0xa6   : > { %v429_v6 = vsel %vm421_vm0, %v428_v5, 0.0  ;;  %v717_v5 = vsel %vm667_vm5, %v712_v4, 0 }
  0xa7   : > { %430 = vadd.xlane.f32.xlu0 %v429_v6 }
  0xe7   : > { %v585_v30 = vpop.f32.mrb[0].mxu1 }
  0xe8   : > { %v586_v31 = vadd.f32 %v1344_v29, %v585_v30  ;;  %v1407_v32 = vpop.f32.mrb[1].mxu1 }
  0xe9   : > { %v588_v33 = vpop.f32.mrb[2].mxu1 }
  0xea   : > { %v1660_v34 = vpack.c.bf16 %v586_v31, %v586_v31  ;;  %v1408_v35 = vpop.f32.mrb[3].mxu1 }
  0xec   : > { %662 = vrot.lane.b32.xlu0 %v1660_v34, %s1532_s23  ;;  %v604_v36 = vsel %vm599_vm4, %v1660_v34, 0 }
 0x134   : > { %v431_v14 = vpop.xlane.xlu0 %430 }
 0x135   : > { %v432_v15 = vmul.f32 0.032258064, %v431_v14 }
 0x137   : > { %1502 = vrsqrt.f32 %v432_v15  ;;  %vm442_vm2 = vcmp.eq.f32.partialorder %v432_v15, inf  ;;  %v445_v18 = vand.u32 2147483648, %v432_v15  ;;  %vm444_vm3 = vcmp.eq.f32.partialorder %v432_v15, 0.0 }
 0x141   : > { %v1503_v16 = vpop.eup %1502 }
 0x142   : > { %v441_v17 = vmul.f32 %v1503_v16, %v432_v15 }
 0x144   : > { %v443_v19 = vsel %vm442_vm2, %v432_v15, %v441_v17 }
 0x145   : > { %v446_v20 = vsel %vm444_vm3, %v445_v18, %v443_v19 }
 0x146   : > { %v447_v21 = vadd.f32 1e-06, %v446_v20 }
 0x148   : > { %1504 = vrcp.f32 %v447_v21 }
 0x152   : > { %v1505_v24 = vpop.eup %1504 }
 0x153   : > { %v449_v26 = vmul.f32 %v1505_v24, %v439_v23 }
 0x155   : > { %v456_v27 = vadd.f32 %v1339_v25, %v449_v26 }
 0x157   : > { %v461_v28 = vpack.c.bf16 %v456_v27, %v456_v27 }
 0x159   : > { %1398 = vmatmul.mubr.msk.bf16.vlgmr.msra.gmra.mrb[0].mxu0 %vm421_vm0, %v461_v28 }
 0x15a   : > { %1411 = vmatprep.mubr.msk.bf16.mxu0 %vm1531_vm1, %v1530_v8  ;;  %1410 = vmatpush3.bf16.xpose.msra.mxu0 %v604_v36 }
 0x15b   : > { %1421 = vmatprep.subr.bf16.mxu0 %v1530_v8 }
 0x15e   : > { %v663_v37 = vpop.permute.xlu0 %662 }
 0x15f   : > { %v669_v38 = vsel %vm667_vm5, %v663_v37, 0 }
 0x160   : > { %1416 = vmatpush3.bf16.msra.mxu1 %v669_v38  ;;  %v593_v38 = vld [vmem:[%s1789_s9 + $0x8] sm:$0xff] }
 0x161   : > { %1427 = vmatprep.subr.bf16.mxu1 %v1530_v8 }
 0x22c   : > { %v518_v40 = vpop.f32.mrb[0].mxu0 }
 0x22d   : > { %v519_v41 = vadd.f32 %v1340_v39, %v518_v40  ;;  %v1399_v42 = vpop.f32.mrb[1].mxu0  ;;  %v880_v39 = vpack.c.bf16 %v593_v38, %v593_v38 }
 0x22e   : > { %v521_v43 = vpop.f32.mrb[2].mxu0 }
 0x22f   : > { %v1671_v44 = vpack.c.bf16 %v519_v41, %v519_v41  ;;  %v1400_v45 = vpop.f32.mrb[3].mxu0  ;;  %v885_v40 = vsel %vm667_vm5, %v880_v39, 0 }
 0x231   : > { %1412 = vmatmul.mubr.msk.bf16.vlgmr.msra.gmra.mrb[4].mxu0 %vm599_vm4, %v1671_v44 }
 0x232   : > { %1423 = vmatprep.mubr.msk.bf16.mxu0 %vm1531_vm1, %v1530_v8  ;;  %1422 = vmatpush3.bf16.msra.mxu0 %v717_v5 }
 0x233   : > { %1433 = vmatprep.subr.bf16.mxu0 %v1530_v8 }
 0x304   : > { %v640_v47 = vpop.f32.mrb[4].mxu0 }
 0x305   : > { %v646_v48 = vmul.f32 0.35355338, %v640_v47  ;;  %v1413_v49 = vpop.f32.mrb[5].mxu0 }
 0x306   : > { %v643_v50 = vpop.f32.mrb[6].mxu0 }
 0x307   : > { %v1414_v51 = vpop.f32.mrb[7].mxu0  ;;  %v648_v52 = vsel %vm647_vm6, -1e+09, %v646_v48 }
 0x308   : > { %v649_v53 = vsel %vm599_vm4, %v648_v52, -inf }
 0x309   : > { %650 = vmax.xlane.f32.xlu1 %v649_v53 }
 0x396   : > { %v651_v54 = vpop.xlane.xlu1 %650 }
 0x397   : > { %v652_v55 = vsub.f32 %v648_v52, %v651_v54 }
 0x399   : > { %v653_v56 = vmul.f32 1.442695, %v652_v55 }
 0x39b   : > { %1506 = vpow2.f32 %v653_v56 }
 0x3a5   : > { %v1507_v57 = vpop.eup %1506 }
 0x3a6   : > { %v655_v58 = vsel %vm599_vm4, %v1507_v57, 0.0 }
 0x3a7   : > { %656 = vadd.xlane.f32.xlu1 %v655_v58 }
 0x3b8   : > { %769 = vrot.lane.b32.xlu1 %v1660_v34, %s1533_s29 }
 0x3bc   : > { %767 = vrot.lane.b32.xlu1 %v1671_v44, %s1533_s29 }
 0x434   : > { %v657_v59 = vpop.xlane.xlu1 %656 }
 0x435   : > { %1508 = vrcp.f32 %v657_v59 }
 0x438   : > { %v770_v62 = vpop.permute.xlu1 %769 }
 0x439   : > { %v775_v1 = vsel %vm599_vm4, %v770_v62, 0 }
 0x43c   : > { %v768_v2 = vpop.permute.xlu1 %767 }
 0x43f   : > { %v1509_v60 = vpop.eup %1508 }
 0x440   : > { %v659_v61 = vmul.f32 %v1509_v60, %v1507_v57 }
 0x442   : > { %v660_v63 = vpack.c.bf16 %v659_v61, %v659_v61 }
 0x444   : > { %1418 = vmatmul.mubr.msk.bf16.vlgmr.msra.gmra.mrb[4].mxu1 %vm599_vm4, %v660_v63 }
 0x445   : > { %1428 = vmatpush3.bf16.xpose.msra.mxu1 %v775_v1  ;;  %1429 = vmatprep.mubr.msk.bf16.mxu1 %vm1531_vm1, %v1530_v8 }
 0x446   : > { %1439 = vmatprep.subr.bf16.mxu1 %v1530_v8 }
 0x44c   : > { %1430 = vmatmul.mubr.msk.bf16.vlgmr.msra.gmra.mrb[8].mxu1 %vm599_vm4, %v768_v2 }
 0x44d   : > { %1441 = vmatprep.mubr.msk.bf16.mxu1 %vm1531_vm1, %v1530_v8  ;;  %1440 = vmatpush3.bf16.msra.mxu1 %v885_v40 }
 0x44e   : > { %1451 = vmatprep.subr.bf16.mxu1 %v1530_v8 }
 0x517   : > { %v705_v6 = vpop.f32.mrb[4].mxu1 }
 0x518   : > { %v711_v7 = vpack.c.bf16 %v705_v6, %v705_v6  ;;  %v1419_v9 = vpop.f32.mrb[5].mxu1 }
 0x519   : > { %v708_v10 = vpop.f32.mrb[6].mxu1 }
 0x51a   : > { %v1420_v11 = vpop.f32.mrb[7].mxu1  ;;  %1424 = vmatmul.mubr.msk.bf16.vlgmr.msra.gmra.mrb[8].mxu0 %vm599_vm4, %v711_v7 }
 0x51b   : > { %1435 = vmatprep.mubr.msk.bf16.mxu0 %vm1531_vm1, %v1530_v8 }
 0x51f   : > { %v811_v12 = vpop.f32.mrb[8].mxu1 }
 0x520   : > { %v817_v13 = vmul.f32 0.35355338, %v811_v12  ;;  %v1431_v14 = vpop.f32.mrb[9].mxu1 }
 0x521   : > { %v814_v15 = vpop.f32.mrb[10].mxu1 }
 0x522   : > { %v1432_v16 = vpop.f32.mrb[11].mxu1  ;;  %v818_v17 = vsel %vm647_vm6, -1e+09, %v817_v13  ;;  %v594_v13 = vld [vmem:[%s1789_s9 + $0x10] sm:$0xff] }
 0x523   : > { %v819_v18 = vsel %vm599_vm4, %v818_v17, -inf  ;;  %v1041_v14 = vpack.c.bf16 %v594_v13, %v594_v13 }
 0x524   : > { %820 = vmax.xlane.f32.xlu1 %v819_v18 }
 0x525   : > { %v1046_v15 = vsel %vm667_vm5, %v1041_v14, 0 }
 0x535   : > { %930 = vrot.lane.b32.xlu1 %v1660_v34, %s1534_s13 }
 0x539   : > { %928 = vrot.lane.b32.xlu1 %v1671_v44, %s1534_s13 }
 0x5b1   : > { %v821_v19 = vpop.xlane.xlu1 %820 }
 0x5b2   : > { %v822_v20 = vsub.f32 %v818_v17, %v821_v19 }
 0x5b4   : > { %v823_v21 = vmul.f32 1.442695, %v822_v20 }
 0x5b5   : > { %v931_v33 = vpop.permute.xlu1 %930 }
 0x5b6   : > { %1510 = vpow2.f32 %v823_v21  ;;  %v936_v36 = vsel %vm599_vm4, %v931_v33, 0 }
 0x5b9   : > { %v929_v37 = vpop.permute.xlu1 %928 }
 0x5c0   : > { %v1511_v22 = vpop.eup %1510 }
 0x5c1   : > { %v825_v23 = vsel %vm599_vm4, %v1511_v22, 0.0 }
 0x5c2   : > { %826 = vadd.xlane.f32.xlu0 %v825_v23 }
 0x5d8   : > { %831 = vrot.lane.b32.xlu0 %v1660_v34, %s1535_s14 }
 0x5ed   : > { %v753_v24 = vpop.f32.mrb[8].mxu0 }
 0x5ee   : > { %v1425_v25 = vpop.f32.mrb[9].mxu0 }
 0x5ef   : > { %v756_v26 = vpop.f32.mrb[10].mxu0 }
 0x5f0   : > { %v1426_v27 = vpop.f32.mrb[11].mxu0 }
 0x64f   : > { %v827_v28 = vpop.xlane.xlu0 %826 }
 0x650   : > { %1512 = vrcp.f32 %v827_v28 }
 0x653   : > { %v832_v29 = vpop.permute.xlu0 %831 }
 0x654   : > { %v837_v30 = vsel %vm667_vm5, %v832_v29, 0 }
 0x655   : > { %1434 = vmatpush3.bf16.msra.mxu0 %v837_v30 }
 0x656   : > { %1445 = vmatprep.subr.bf16.mxu0 %v1530_v8 }
 0x65a   : > { %v1513_v31 = vpop.eup %1512 }
 0x65b   : > { %v829_v32 = vmul.f32 %v1513_v31, %v1511_v22 }
 0x65d   : > { %v830_v35 = vpack.c.bf16 %v829_v32, %v829_v32 }
 0x65f   : > { %1436 = vmatmul.mubr.msk.bf16.vlgmr.msra.gmra.mrb[12].mxu0 %vm599_vm4, %v830_v35 }
 0x660   : > { %1446 = vmatpush3.bf16.xpose.msra.mxu0 %v936_v36  ;;  %1447 = vmatprep.mubr.msk.bf16.mxu0 %vm1531_vm1, %v1530_v8 }
 0x661   : > { %1457 = vmatprep.subr.bf16.mxu0 %v1530_v8 }
 0x667   : > { %1448 = vmatmul.mubr.msk.bf16.vlgmr.msra.gmra.mrb[16].mxu0 %vm599_vm4, %v929_v37 }
 0x668   : > { %1459 = vmatprep.mubr.msk.bf16.mxu0 %vm1531_vm1, %v1530_v8  ;;  %1458 = vmatpush3.bf16.msra.mxu0 %v1046_v15 }
 0x669   : > { %1469 = vmatprep.subr.bf16.mxu0 %v1530_v8 }
 0x732   : > { %v873_v41 = vpop.f32.mrb[12].mxu0 }
 0x733   : > { %v879_v42 = vpack.c.bf16 %v873_v41, %v873_v41  ;;  %v1437_v43 = vpop.f32.mrb[13].mxu0 }
 0x734   : > { %v876_v45 = vpop.f32.mrb[14].mxu0 }
 0x735   : > { %v1438_v47 = vpop.f32.mrb[15].mxu0  ;;  %1442 = vmatmul.mubr.msk.bf16.vlgmr.msra.gmra.mrb[12].mxu1 %vm599_vm4, %v879_v42 }
 0x736   : > { %1453 = vmatprep.mubr.msk.bf16.mxu1 %vm1531_vm1, %v1530_v8 }
 0x73a   : > { %v972_v48 = vpop.f32.mrb[16].mxu0 }
 0x73b   : > { %v978_v49 = vmul.f32 0.35355338, %v972_v48  ;;  %v1449_v50 = vpop.f32.mrb[17].mxu0 }
 0x73c   : > { %v975_v51 = vpop.f32.mrb[18].mxu0 }
 0x73d   : > { %v1450_v52 = vpop.f32.mrb[19].mxu0  ;;  %v979_v53 = vsel %vm647_vm6, -1e+09, %v978_v49 }
 0x73e   : > { %v980_v54 = vsel %vm599_vm4, %v979_v53, -inf }
 0x73f   : > { %981 = vmax.xlane.f32.xlu0 %v980_v54 }
 0x755   : > { %992 = vrot.lane.b32.xlu0 %v1660_v34, %s1536_s18 }
 0x759   : > { %1089 = vrot.lane.b32.xlu0 %v1671_v44, %s1537_s20  ;;  %v1351_v44 = vld [vmem:[%s1790_s10] ss:$0 sm:$0xff] }
 0x75a   : > { %v765_v62 = vadd.f32 %v1351_v44, %v753_v24 }
 0x7cc   : > { %v982_v55 = vpop.xlane.xlu0 %981 }
 0x7cd   : > { %v983_v56 = vsub.f32 %v979_v53, %v982_v55 }
 0x7cf   : > { %v984_v57 = vmul.f32 1.442695, %v983_v56 }
 0x7d0   : > { %v993_v58 = vpop.permute.xlu0 %992 }
 0x7d1   : > { %1514 = vpow2.f32 %v984_v57  ;;  %v998_v59 = vsel %vm667_vm5, %v993_v58, 0 }
 0x7d2   : > { %1452 = vmatpush3.bf16.msra.mxu1 %v998_v59 }
 0x7d3   : > { %1463 = vmatprep.subr.bf16.mxu1 %v1530_v8 }
 0x7d4   : > { %v1090_v12 = vpop.permute.xlu0 %1089 }
 0x7db   : > { %v1515_v60 = vpop.eup %1514 }
 0x7dc   : > { %v986_v61 = vsel %vm599_vm4, %v1515_v60, 0.0 }
 0x7dd   : > { %987 = vadd.xlane.f32.xlu1 %v986_v61 }
 0x7ee   : > { %1091 = vrot.lane.b32.xlu1 %v1660_v34, %s1537_s20 }
 0x808   : > { %v921_v63 = vpop.f32.mrb[12].mxu1 }
 0x809   : > { %v927_v1 = vadd.f32 %v921_v63, %v765_v62  ;;  %v1443_v2 = vpop.f32.mrb[13].mxu1 }
 0x80a   : > { %v924_v3 = vpop.f32.mrb[14].mxu1 }
 0x80b   : > { %v1444_v4 = vpop.f32.mrb[15].mxu1 }
 0x86a   : > { %v988_v5 = vpop.xlane.xlu1 %987 }
 0x86b   : > { %1516 = vrcp.f32 %v988_v5 }
 0x86e   : > { %v1092_v9 = vpop.permute.xlu1 %1091 }
 0x86f   : > { %v1097_v11 = vsel %vm599_vm4, %v1092_v9, 0 }
 0x875   : > { %v1517_v6 = vpop.eup %1516 }
 0x876   : > { %v990_v7 = vmul.f32 %v1517_v6, %v1515_v60 }
 0x878   : > { %v991_v10 = vpack.c.bf16 %v990_v7, %v990_v7 }
 0x87a   : > { %1454 = vmatmul.mubr.msk.bf16.vlgmr.msra.gmra.mrb[16].mxu1 %vm599_vm4, %v991_v10 }
 0x87b   : > { %1464 = vmatpush3.bf16.xpose.msra.mxu1 %v1097_v11  ;;  %1465 = vmatprep.mubr.msk.bf16.mxu1 %vm1531_vm1, %v1530_v8 }
 0x87c   : > { %1475 = vmatprep.subr.bf16.mxu1 %v1530_v8 }
 0x882   : > { %1466 = vmatmul.mubr.msk.bf16.vlgmr.msra.gmra.mrb[20].mxu1 %vm599_vm4, %v1090_v12 }
 0x883   : > { %1477 = vmatprep.mubr.msk.bf16.mxu1 %vm1531_vm1, %v1530_v8 }
 0x94d   : > { %v1034_v16 = vpop.f32.mrb[16].mxu1 }
 0x94e   : > { %v1040_v17 = vpack.c.bf16 %v1034_v16, %v1034_v16  ;;  %v1455_v18 = vpop.f32.mrb[17].mxu1 }
 0x94f   : > { %v1037_v19 = vpop.f32.mrb[18].mxu1 }
 0x950   : > { %v1456_v20 = vpop.f32.mrb[19].mxu1  ;;  %1460 = vmatmul.mubr.msk.bf16.vlgmr.msra.gmra.mrb[20].mxu0 %vm599_vm4, %v1040_v17 }
 0x951   : > { %1471 = vmatprep.mubr.msk.bf16.mxu0 %vm1531_vm1, %v1530_v8  ;;  %v595_v8 = vld [vmem:[%s1789_s9 + $0x18] sm:$0xff] }
 0x952   : > { %v1202_v46 = vpack.c.bf16 %v595_v8, %v595_v8 }
 0x954   : > { %v1207_v33 = vsel %vm667_vm5, %v1202_v46, 0 }
 0x955   : > { %v1133_v21 = vpop.f32.mrb[20].mxu1  ;;  %1476 = vmatpush3.bf16.msra.mxu1 %v1207_v33 }
 0x956   : > { %v1139_v22 = vmul.f32 0.35355338, %v1133_v21  ;;  %v1467_v23 = vpop.f32.mrb[21].mxu1 }
 0x957   : > { %v1136_v24 = vpop.f32.mrb[22].mxu1 }
 0x958   : > { %v1468_v25 = vpop.f32.mrb[23].mxu1  ;;  %v1140_v26 = vsel %vm647_vm6, -1e+09, %v1139_v22 }
 0x959   : > { %v1141_v27 = vsel %vm599_vm4, %v1140_v26, -inf }
 0x95a   : > { %1142 = vmax.xlane.f32.xlu1 %v1141_v27 }
 0x9e7   : > { %v1143_v28 = vpop.xlane.xlu1 %1142 }
 0x9e8   : > { %v1144_v29 = vsub.f32 %v1140_v26, %v1143_v28 }
 0x9ea   : > { %v1145_v30 = vmul.f32 1.442695, %v1144_v29 }
 0x9ec   : > { %1518 = vpow2.f32 %v1145_v30 }
 0x9f6   : > { %v1519_v31 = vpop.eup %1518 }
 0x9f7   : > { %v1147_v32 = vsel %vm599_vm4, %v1519_v31, 0.0 }
 0x9f8   : > { %1148 = vadd.xlane.f32.xlu0 %v1147_v32 }
 0xa0e   : > { %1153 = vrot.lane.b32.xlu0 %v1660_v34, %s1538_s25 }
 0xa23   : > { %v1082_v35 = vpop.f32.mrb[20].mxu0 }
 0xa24   : > { %v1088_v36 = vadd.f32 %v1082_v35, %v927_v1  ;;  %v1461_v37 = vpop.f32.mrb[21].mxu0 }
 0xa25   : > { %v1085_v38 = vpop.f32.mrb[22].mxu0 }
 0xa26   : > { %v1462_v39 = vpop.f32.mrb[23].mxu0 }
 0xa85   : > { %v1149_v40 = vpop.xlane.xlu0 %1148 }
 0xa86   : > { %1520 = vrcp.f32 %v1149_v40 }
 0xa89   : > { %v1154_v41 = vpop.permute.xlu0 %1153 }
 0xa8a   : > { %v1159_v42 = vsel %vm667_vm5, %v1154_v41, 0 }
 0xa8b   : > { %1470 = vmatpush3.bf16.msra.mxu0 %v1159_v42 }
 0xa90   : > { %v1521_v34 = vpop.eup %1520 }
 0xa91   : > { %v1151_v43 = vmul.f32 %v1521_v34, %v1519_v31 }
 0xa93   : > { %v1152_v45 = vpack.c.bf16 %v1151_v43, %v1151_v43 }
 0xa95   : > { %1472 = vmatmul.mubr.msk.bf16.vlgmr.msra.gmra.mrb[24].mxu0 %vm599_vm4, %v1152_v45 }
 0xb68   : > { %v1195_v47 = vpop.f32.mrb[24].mxu0 }
 0xb69   : > { %v1201_v48 = vpack.c.bf16 %v1195_v47, %v1195_v47  ;;  %v1473_v49 = vpop.f32.mrb[25].mxu0 }
 0xb6a   : > { %v1198_v50 = vpop.f32.mrb[26].mxu0 }
 0xb6b   : > { %v1474_v51 = vpop.f32.mrb[27].mxu0  ;;  %1478 = vmatmul.mubr.msk.bf16.vlgmr.msra.gmra.mrb[24].mxu1 %vm599_vm4, %v1201_v48 }
 0xc3e   : > { %v1243_v52 = vpop.f32.mrb[24].mxu1 }
 0xc3f   : > { %v1249_v53 = vadd.f32 %v1243_v52, %v1088_v36  ;;  %v1479_v54 = vpop.f32.mrb[25].mxu1 }
 0xc40   : > { %v1246_v55 = vpop.f32.mrb[26].mxu1 }
 0xc41   : > { %v1250_v56 = vadd.f32 %v1249_v53, %v1613_v0  ;;  %v1480_v57 = vpop.f32.mrb[27].mxu1 }
 0xc43   : > { %1251 = vst.msk [vmem:[%s415_s30] sm:$0xff] %vm421_vm0, %v1250_v56 }
 0xc44 PF: > { %s21_s17 = sadd.s32 1, %s1528_s17  }
 0xc45   : > { %p18_p4 = scmp.ge.s32.totalorder %s21_s17, 4  }
 0xc47   :  { %20 = sbr.rel (!%p18_p4) target bundleno = 1 (0x1), region = 100 }

// kernel: decoder_forward.9
= control target key start
LH: loop header
LB: loop body
LE: loop exit
PB: predicated region body
PF: predicated region fallthrough
CT: control target
= control target key end

     0   :  { %s1396_s27 = smov 0   ;;  %s1557_s0 = inlined_call_operand.vmem [shape: f32[2,8,32], index: 0, kind: input, shape index: {}]   ;;  %s1558_s1 = inlined_call_operand.vmem [shape: f32[2,8,8], index: 1, kind: input, shape index: {}]   ;;  %s1559_s2 = inlined_call_operand.vmem [shape: f32[1,32], index: 2, kind: input, shape index: {}]   ;;  %s1560_s3 = inlined_call_operand.vmem [shape: f32[1,32], index: 3, kind: input, shape index: {}]   ;;  %s1561_s4 = inlined_call_operand.vmem [shape: bf16[32,96], index: 4, kind: input, shape index: {}]   ;;  %s1562_s5 = inlined_call_operand.vmem [shape: f32[1,96], index: 5, kind: input, shape index: {}]   ;;  %s1563_s6 = inlined_call_operand.vmem [shape: f32[32,32], index: 6, kind: input, shape index: {}]   ;;  %s1564_s7 = inlined_call_operand.vmem [shape: f32[1,32], index: 7, kind: input, shape index: {}]   ;;  %s1565_s8 = inlined_call_operand.vmem [shape: f32[2,8,32], index: 8, kind: output, shape index: {}]  }
   0x1 LB: > { %s1151_s28 = sadd.s32 4294967295, %s1336_s27   ;;  %p1155_p0 = scmp.ge.s32.totalorder %s1336_s27, 1  ;;  %s1336_s27 = sphi %s1396_s27, %s18_s27  }
   0x2   : > { %p270_p1 = scmp.lt.s32.totalorder %s1336_s27, 3 }
   0x4   : > { %p271_p2 = pnand %p1155_p0, %p270_p1 }
   0x5   : > { %p306_p3 = scmp.lt.s32.totalorder (!%p271_p2), %s1151_s28, 1  ;;  %vm322_vm0 = vcmask (!%p271_p2), 261120   ;;  %v1308_v7 = vld [vmem:[%s1561_s4] sm:$0xff] (!%p271_p2)   ;;  %v1338_v8 = vmov (!%p271_p2), 0.0   ;;  %vm1339_vm1 = vmmov (!%p271_p2), 0   ;;  %v1309_v9 = vld [vmem:[%s1561_s4 + $0x8] sm:$0xff] (!%p271_p2)  }
   0x6   : > { %274 = sbr.rel (%p271_p2) target bundleno = 3263 (0xcbf), region = 52  ;;  %1207 = vmatprep.subr.bf16.mxu0 (!%p271_p2), %v1338_v8  ;;  %1211 = vmatprep.mubr.msk.bf16.mxu0 (!%p271_p2), %vm1339_vm1, %v1338_v8  ;;  %v1159_v18 = vld [vmem:[%s1559_s2] ss:$0 sm:$0xff] (!%p271_p2)  ;;  %s1340_s21 = smov (!%p271_p2), 64   ;;  %vm502_vm4 = vcmask (!%p271_p2), 1043456   ;;  %vm435_vm5 = vcmask (!%p271_p2), 64512  }
   0x7   : > { %1208 = vmatpush3.bf16.msra.mxu0 (!%p271_p2), %v1308_v7  ;;  %1215 = vmatprep.subr.bf16.mxu1 (!%p271_p2), %v1338_v8  ;;  %v1160_v21 = vld [vmem:[%s1560_s3] ss:$0 sm:$0xff] (!%p271_p2)  ;;  %s1341_s22 = smov (!%p271_p2), 96   ;;  %s1342_s26 = smov (!%p271_p2), 88  }
   0x8   : > { %1209 = vmatprep.subr.bf16.mxu0 (!%p271_p2), %v1338_v8  ;;  %1217 = vmatprep.mubr.msk.bf16.mxu1 (!%p271_p2), %vm1339_vm1, %v1338_v8  ;;  %v1161_v25 = vld [vmem:[%s1562_s5] ss:$0 sm:$0xff] (!%p271_p2)  ;;  %s1345_s11 = smov (!%p271_p2), 80   ;;  %s1346_s12 = smov (!%p271_p2), 112  }
   0x9   : > { %v426_v56 = vld [vmem:[%s1563_s6] sm:$0xff] (!%p271_p2)  ;;  %s1347_s13 = smov (!%p271_p2), 48   ;;  %s1348_s16 = smov (!%p271_p2), 72  }
   0xa   : > { %v547_v57 = vpack.c.bf16 (!%p271_p2), %v426_v56, %v426_v56  ;;  %s1349_s17 = smov (!%p271_p2), 104  }
   0xb   : > { %1210 = vmatpush3.bf16.msra.mxu0 (!%p271_p2), %v1309_v9 }
   0xc   : > { %1221 = vmatprep.subr.bf16.mxu0 (!%p271_p2), %v1338_v8  ;;  %v552_v58 = vsel (!%p271_p2), %vm502_vm4, %v547_v57, 0 }
   0xd   : > { %s1567_s28 = smov (!%p306_p3, %s1151_s28), 1 }
   0xe   : > { %s1404_s29 = sshll.u32 %s1567_s28, 3  ;;  %s1343_s28 = smov 120  }
   0xf   : > { %s309_s10 = scalar_lea.vmem %s1557_s0, %s1404_s29  ;;  %s313_s25 = scalar_lea.vmem %s1558_s1, %s1404_s29 }
  0x10   : > { %v1410_v0 = vld [vmem:[%s309_s10] sm:$0xff]  ;;  %s1344_s10 = smov 56  }
  0x11   : > { %v323_v1 = vsel %vm322_vm0, %v1410_v0, 0.0  ;;  %v1458_v36 = vld [vmem:[%s313_s25] sm:$0xff] }
  0x12   : > { %324 = vadd.xlane.f32.xlu0 %v323_v1  ;;  %vm483_vm6 = vcmp.eq.f32.partialorder %v1458_v36, 0.0  ;;  %v429_v36 = vld [vmem:[%s1563_s6 + $0x18] sm:$0xff] }
  0x9f   : > { %v325_v2 = vpop.xlane.xlu0 %324 }
  0xa0   : > { %v327_v3 = vmul.f32 0.03125, %v325_v2 }
  0xa2   : > { %v328_v4 = vsub.f32 %v1410_v0, %v327_v3 }
  0xa4   : > { %v329_v5 = vmul.f32 %v328_v4, %v328_v4  ;;  %v340_v19 = vmul.f32 %v1159_v18, %v328_v4 }
  0xa6   : > { %v330_v6 = vsel %vm322_vm0, %v329_v5, 0.0 }
  0xa7   : > { %331 = vadd.xlane.f32.xlu0 %v330_v6 }
 0x134   : > { %v332_v10 = vpop.xlane.xlu0 %331 }
 0x135   : > { %v333_v11 = vmul.f32 0.032258064, %v332_v10 }
 0x137   : > { %1310 = vrsqrt.f32 %v333_v11  ;;  %vm343_vm2 = vcmp.eq.f32.partialorder %v333_v11, inf  ;;  %v346_v14 = vand.u32 2147483648, %v333_v11  ;;  %vm345_vm3 = vcmp.eq.f32.partialorder %v333_v11, 0.0 }
 0x141   : > { %v1311_v12 = vpop.eup %1310 }
 0x142   : > { %v342_v13 = vmul.f32 %v1311_v12, %v333_v11 }
 0x144   : > { %v344_v15 = vsel %vm343_vm2, %v333_v11, %v342_v13 }
 0x145   : > { %v347_v16 = vsel %vm345_vm3, %v346_v14, %v344_v15 }
 0x146   : > { %v348_v17 = vadd.f32 1e-06, %v347_v16  ;;  %v427_v16 = vld [vmem:[%s1563_s6 + $0x8] sm:$0xff] }
 0x148   : > { %1312 = vrcp.f32 %v348_v17  ;;  %v714_v17 = vpack.c.bf16 %v427_v16, %v427_v16 }
 0x14a   : > { %v719_v18 = vsel %vm502_vm4, %v714_v17, 0 }
 0x152   : > { %v1313_v20 = vpop.eup %1312 }
 0x153   : > { %v350_v22 = vmul.f32 %v1313_v20, %v340_v19 }
 0x155   : > { %v357_v23 = vadd.f32 %v1160_v21, %v350_v22 }
 0x157   : > { %v362_v24 = vpack.c.bf16 %v357_v23, %v357_v23 }
 0x159   : > { %1212 = vmatmul.mubr.msk.bf16.vlgmr.msra.gmra.mrb[0].mxu0 %vm322_vm0, %v362_v24 }
 0x15a   : > { %1223 = vmatprep.mubr.msk.bf16.mxu0 %vm1339_vm1, %v1338_v8 }
 0x22c   : > { %v419_v26 = vpop.f32.mrb[0].mxu0 }
 0x22d   : > { %v420_v27 = vadd.f32 %v1161_v25, %v419_v26  ;;  %v1213_v28 = vpop.f32.mrb[1].mxu0 }
 0x22e   : > { %v422_v29 = vpop.f32.mrb[2].mxu0 }
 0x22f   : > { %v1442_v30 = vpack.c.bf16 %v420_v27, %v420_v27  ;;  %v1214_v31 = vpop.f32.mrb[3].mxu0 }
 0x231   : > { %497 = vrot.lane.b32.xlu0 %v1442_v30, %s1340_s21  ;;  %433 = vrot.lane.b32.xlu1 %v1442_v30, %s1341_s22  ;;  %s1350_s22 = smov 40  }
 0x2a3   : > { %v498_v32 = vpop.permute.xlu0 %497  ;;  %v434_v33 = vpop.permute.xlu1 %433 }
 0x2a4   : > { %v504_v34 = vsel %vm502_vm4, %v498_v32, 0  ;;  %v440_v35 = vsel %vm435_vm5, %v434_v33, 0 }
 0x2a5   : > { %1216 = vmatpush3.bf16.xpose.msra.mxu1 %v440_v35  ;;  %1222 = vmatpush3.bf16.msra.mxu0 %v504_v34 }
 0x2a6   : > { %1233 = vmatprep.subr.bf16.mxu0 %v1338_v8  ;;  %1227 = vmatprep.subr.bf16.mxu1 %v1338_v8 }
 0x2ac   : > { %1218 = vmatmul.mubr.msk.bf16.vlgmr.msra.gmra.mrb[0].mxu1 %vm435_vm5, %v1442_v30 }
 0x2ad   : > { %1229 = vmatprep.mubr.msk.bf16.mxu1 %vm1339_vm1, %v1338_v8  ;;  %1228 = vmatpush3.bf16.msra.mxu1 %v552_v58 }
 0x2ae   : > { %1239 = vmatprep.subr.bf16.mxu1 %v1338_v8 }
 0x37f   : > { %v476_v37 = vpop.f32.mrb[0].mxu1 }
 0x380   : > { %v482_v38 = vmul.f32 0.35355338, %v476_v37  ;;  %v1219_v39 = vpop.f32.mrb[1].mxu1 }
 0x381   : > { %v479_v40 = vpop.f32.mrb[2].mxu1 }
 0x382   : > { %v1220_v41 = vpop.f32.mrb[3].mxu1  ;;  %v484_v42 = vsel %vm483_vm6, -1e+09, %v482_v38 }
 0x383   : > { %v485_v43 = vsel %vm435_vm5, %v484_v42, -inf }
 0x384   : > { %486 = vmax.xlane.f32.xlu1 %v485_v43 }
 0x411   : > { %v487_v44 = vpop.xlane.xlu1 %486 }
 0x412   : > { %v488_v45 = vsub.f32 %v484_v42, %v487_v44 }
 0x414   : > { %v489_v46 = vmul.f32 1.442695, %v488_v45 }
 0x416   : > { %1314 = vpow2.f32 %v489_v46 }
 0x420   : > { %v1315_v47 = vpop.eup %1314 }
 0x421   : > { %v491_v48 = vsel %vm435_vm5, %v1315_v47, 0.0 }
 0x422   : > { %492 = vadd.xlane.f32.xlu0 %v491_v48 }
 0x438   : > { %603 = vrot.lane.b32.xlu0 %v1442_v30, %s1342_s26 }
 0x43c   : > { %601 = vrot.lane.b32.xlu0 %v1442_v30, %s1343_s28  ;;  %s317_s28 = scalar_lea.vmem %s1565_s8, %s1404_s29 }
 0x4af   : > { %v493_v49 = vpop.xlane.xlu0 %492 }
 0x4b0   : > { %1316 = vrcp.f32 %v493_v49 }
 0x4b3   : > { %v604_v52 = vpop.permute.xlu0 %603 }
 0x4b4   : > { %v609_v54 = vsel %vm435_vm5, %v604_v52, 0 }
 0x4b7   : > { %v602_v55 = vpop.permute.xlu0 %601 }
 0x4ba   : > { %v1317_v50 = vpop.eup %1316 }
 0x4bb   : > { %v495_v51 = vmul.f32 %v1317_v50, %v1315_v47 }
 0x4bd   : > { %v496_v53 = vpack.c.bf16 %v495_v51, %v495_v51  ;;  %v1168_v51 = vld [vmem:[%s1564_s7] ss:$0 sm:$0xff] }
 0x4bf   : > { %1224 = vmatmul.mubr.msk.bf16.vlgmr.msra.gmra.mrb[4].mxu0 %vm435_vm5, %v496_v53 }
 0x4c0   : > { %1234 = vmatpush3.bf16.xpose.msra.mxu0 %v609_v54  ;;  %1235 = vmatprep.mubr.msk.bf16.mxu0 %vm1339_vm1, %v1338_v8 }
 0x4c1   : > { %1245 = vmatprep.subr.bf16.mxu0 %v1338_v8 }
 0x4c7   : > { %1236 = vmatmul.mubr.msk.bf16.vlgmr.msra.gmra.mrb[8].mxu0 %vm435_vm5, %v602_v55 }
 0x4c8   : > { %1247 = vmatprep.mubr.msk.bf16.mxu0 %vm1339_vm1, %v1338_v8  ;;  %1246 = vmatpush3.bf16.msra.mxu0 %v719_v18 }
 0x4c9   : > { %1257 = vmatprep.subr.bf16.mxu0 %v1338_v8 }
 0x592   : > { %v540_v59 = vpop.f32.mrb[4].mxu0 }
 0x593   : > { %v546_v60 = vpack.c.bf16 %v540_v59, %v540_v59  ;;  %v1225_v61 = vpop.f32.mrb[5].mxu0 }
 0x594   : > { %v543_v62 = vpop.f32.mrb[6].mxu0 }
 0x595   : > { %v1226_v63 = vpop.f32.mrb[7].mxu0  ;;  %1230 = vmatmul.mubr.msk.bf16.vlgmr.msra.gmra.mrb[4].mxu1 %vm435_vm5, %v546_v60 }
 0x596   : > { %1241 = vmatprep.mubr.msk.bf16.mxu1 %vm1339_vm1, %v1338_v8 }
 0x59a   : > { %v645_v1 = vpop.f32.mrb[8].mxu0 }
 0x59b   : > { %v651_v2 = vmul.f32 0.35355338, %v645_v1  ;;  %v1237_v3 = vpop.f32.mrb[9].mxu0 }
 0x59c   : > { %v648_v4 = vpop.f32.mrb[10].mxu0 }
 0x59d   : > { %v1238_v5 = vpop.f32.mrb[11].mxu0  ;;  %v652_v6 = vsel %vm483_vm6, -1e+09, %v651_v2  ;;  %v428_v2 = vld [vmem:[%s1563_s6 + $0x10] sm:$0xff] }
 0x59e   : > { %v653_v7 = vsel %vm435_vm5, %v652_v6, -inf  ;;  %v875_v3 = vpack.c.bf16 %v428_v2, %v428_v2 }
 0x59f   : > { %654 = vmax.xlane.f32.xlu1 %v653_v7 }
 0x5a0   : > { %v880_v4 = vsel %vm502_vm4, %v875_v3, 0 }
 0x5b0   : > { %665 = vrot.lane.b32.xlu1 %v1442_v30, %s1344_s10 }
 0x5b4   : > { %764 = vrot.lane.b32.xlu1 %v1442_v30, %s1345_s11 }
 0x5b8   : > { %762 = vrot.lane.b32.xlu1 %v1442_v30, %s1346_s12 }
 0x62c   : > { %v655_v9 = vpop.xlane.xlu1 %654 }
 0x62d   : > { %v656_v10 = vsub.f32 %v652_v6, %v655_v9 }
 0x62f   : > { %v657_v11 = vmul.f32 1.442695, %v656_v10 }
 0x630   : > { %v666_v12 = vpop.permute.xlu1 %665 }
 0x631   : > { %1318 = vpow2.f32 %v657_v11  ;;  %v671_v13 = vsel %vm502_vm4, %v666_v12, 0 }
 0x632   : > { %1240 = vmatpush3.bf16.msra.mxu1 %v671_v13 }
 0x633   : > { %1251 = vmatprep.subr.bf16.mxu1 %v1338_v8 }
 0x634   : > { %v765_v26 = vpop.permute.xlu1 %764 }
 0x635   : > { %v770_v28 = vsel %vm435_vm5, %v765_v26, 0 }
 0x638   : > { %v763_v29 = vpop.permute.xlu1 %762 }
 0x63b   : > { %v1319_v14 = vpop.eup %1318 }
 0x63c   : > { %v659_v15 = vsel %vm435_vm5, %v1319_v14, 0.0 }
 0x63d   : > { %660 = vadd.xlane.f32.xlu0 %v659_v15 }
 0x653   : > { %826 = vrot.lane.b32.xlu0 %v1442_v30, %s1347_s13 }
 0x668   : > { %v588_v19 = vpop.f32.mrb[4].mxu1 }
 0x669   : > { %v1231_v20 = vpop.f32.mrb[5].mxu1  ;;  %v600_v52 = vadd.f32 %v1168_v51, %v588_v19 }
 0x66a   : > { %v591_v21 = vpop.f32.mrb[6].mxu1 }
 0x66b   : > { %v1232_v22 = vpop.f32.mrb[7].mxu1 }
 0x6ca   : > { %v661_v23 = vpop.xlane.xlu0 %660 }
 0x6cb   : > { %1320 = vrcp.f32 %v661_v23 }
 0x6ce   : > { %v827_v31 = vpop.permute.xlu0 %826 }
 0x6cf   : > { %v832_v37 = vsel %vm502_vm4, %v827_v31, 0 }
 0x6d5   : > { %v1321_v24 = vpop.eup %1320 }
 0x6d6   : > { %v663_v25 = vmul.f32 %v1321_v24, %v1319_v14  ;;  %v1036_v24 = vpack.c.bf16 %v429_v36, %v429_v36 }
 0x6d8   : > { %v664_v27 = vpack.c.bf16 %v663_v25, %v663_v25  ;;  %v1041_v25 = vsel %vm502_vm4, %v1036_v24, 0 }
 0x6da   : > { %1242 = vmatmul.mubr.msk.bf16.vlgmr.msra.gmra.mrb[8].mxu1 %vm435_vm5, %v664_v27 }
 0x6db   : > { %1252 = vmatpush3.bf16.xpose.msra.mxu1 %v770_v28  ;;  %1253 = vmatprep.mubr.msk.bf16.mxu1 %vm1339_vm1, %v1338_v8 }
 0x6dc   : > { %1263 = vmatprep.subr.bf16.mxu1 %v1338_v8 }
 0x6e2   : > { %1254 = vmatmul.mubr.msk.bf16.vlgmr.msra.gmra.mrb[12].mxu1 %vm435_vm5, %v763_v29 }
 0x6e3   : > { %1265 = vmatprep.mubr.msk.bf16.mxu1 %vm1339_vm1, %v1338_v8  ;;  %1264 = vmatpush3.bf16.msra.mxu1 %v880_v4 }
 0x6e4   : > { %1275 = vmatprep.subr.bf16.mxu1 %v1338_v8 }
 0x7ad   : > { %v707_v32 = vpop.f32.mrb[8].mxu1 }
 0x7ae   : > { %v713_v33 = vpack.c.bf16 %v707_v32, %v707_v32  ;;  %v1243_v34 = vpop.f32.mrb[9].mxu1 }
 0x7af   : > { %v710_v35 = vpop.f32.mrb[10].mxu1 }
 0x7b0   : > { %v1244_v38 = vpop.f32.mrb[11].mxu1  ;;  %1248 = vmatmul.mubr.msk.bf16.vlgmr.msra.gmra.mrb[12].mxu0 %vm435_vm5, %v713_v33 }
 0x7b1   : > { %1258 = vmatpush3.bf16.msra.mxu0 %v832_v37  ;;  %1259 = vmatprep.mubr.msk.bf16.mxu0 %vm1339_vm1, %v1338_v8 }
 0x7b2   : > { %1269 = vmatprep.subr.bf16.mxu0 %v1338_v8 }
 0x7b5   : > { %v806_v39 = vpop.f32.mrb[12].mxu1 }
 0x7b6   : > { %v812_v40 = vmul.f32 0.35355338, %v806_v39  ;;  %v1255_v41 = vpop.f32.mrb[13].mxu1 }
 0x7b7   : > { %v809_v42 = vpop.f32.mrb[14].mxu1 }
 0x7b8   : > { %v1256_v43 = vpop.f32.mrb[15].mxu1  ;;  %v813_v44 = vsel %vm483_vm6, -1e+09, %v812_v40 }
 0x7b9   : > { %v814_v45 = vsel %vm435_vm5, %v813_v44, -inf }
 0x7ba   : > { %815 = vmax.xlane.f32.xlu1 %v814_v45 }
 0x847   : > { %v816_v46 = vpop.xlane.xlu1 %815 }
 0x848   : > { %v817_v47 = vsub.f32 %v813_v44, %v816_v46 }
 0x84a   : > { %v818_v48 = vmul.f32 1.442695, %v817_v47 }
 0x84c   : > { %1322 = vpow2.f32 %v818_v48 }
 0x856   : > { %v1323_v49 = vpop.eup %1322 }
 0x857   : > { %v820_v50 = vsel %vm435_vm5, %v1323_v49, 0.0 }
 0x858   : > { %821 = vadd.xlane.f32.xlu0 %v820_v50 }
 0x86e   : > { %925 = vrot.lane.b32.xlu0 %v1442_v30, %s1348_s16 }
 0x872   : > { %923 = vrot.lane.b32.xlu0 %v1442_v30, %s1349_s17 }
 0x883   : > { %v755_v53 = vpop.f32.mrb[12].mxu0 }
 0x884   : > { %v761_v54 = vadd.f32 %v755_v53, %v600_v52  ;;  %v1249_v55 = vpop.f32.mrb[13].mxu0 }
 0x885   : > { %v758_v56 = vpop.f32.mrb[14].mxu0 }
 0x886   : > { %v1250_v57 = vpop.f32.mrb[15].mxu0 }
 0x8e5   : > { %v822_v58 = vpop.xlane.xlu0 %821 }
 0x8e6   : > { %1324 = vrcp.f32 %v822_v58 }
 0x8e9   : > { %v926_v61 = vpop.permute.xlu0 %925 }
 0x8ea   : > { %v931_v63 = vsel %vm435_vm5, %v926_v61, 0 }
 0x8ed   : > { %v924_v1 = vpop.permute.xlu0 %923 }
 0x8f0   : > { %v1325_v59 = vpop.eup %1324 }
 0x8f1   : > { %v824_v60 = vmul.f32 %v1325_v59, %v1323_v49 }
 0x8f3   : > { %v825_v62 = vpack.c.bf16 %v824_v60, %v824_v60 }
 0x8f5   : > { %1260 = vmatmul.mubr.msk.bf16.vlgmr.msra.gmra.mrb[16].mxu0 %vm435_vm5, %v825_v62 }
 0x8f6   : > { %1270 = vmatpush3.bf16.xpose.msra.mxu0 %v931_v63  ;;  %1271 = vmatprep.mubr.msk.bf16.mxu0 %vm1339_vm1, %v1338_v8 }
 0x8f7   : > { %1281 = vmatprep.subr.bf16.mxu0 %v1338_v8 }
 0x8fd   : > { %1272 = vmatmul.mubr.msk.bf16.vlgmr.msra.gmra.mrb[20].mxu0 %vm435_vm5, %v924_v1 }
 0x8fe   : > { %1283 = vmatprep.mubr.msk.bf16.mxu0 %vm1339_vm1, %v1338_v8  ;;  %1282 = vmatpush3.bf16.msra.mxu0 %v1041_v25 }
 0x9c8   : > { %v868_v5 = vpop.f32.mrb[16].mxu0 }
 0x9c9   : > { %v874_v6 = vpack.c.bf16 %v868_v5, %v868_v5  ;;  %v1261_v7 = vpop.f32.mrb[17].mxu0 }
 0x9ca   : > { %v871_v9 = vpop.f32.mrb[18].mxu0 }
 0x9cb   : > { %v1262_v10 = vpop.f32.mrb[19].mxu0  ;;  %1266 = vmatmul.mubr.msk.bf16.vlgmr.msra.gmra.mrb[16].mxu1 %vm435_vm5, %v874_v6 }
 0x9cc   : > { %1277 = vmatprep.mubr.msk.bf16.mxu1 %vm1339_vm1, %v1338_v8 }
 0x9d0   : > { %v967_v11 = vpop.f32.mrb[20].mxu0 }
 0x9d1   : > { %v973_v12 = vmul.f32 0.35355338, %v967_v11  ;;  %v1273_v13 = vpop.f32.mrb[21].mxu0 }
 0x9d2   : > { %v970_v14 = vpop.f32.mrb[22].mxu0 }
 0x9d3   : > { %v1274_v15 = vpop.f32.mrb[23].mxu0  ;;  %v974_v16 = vsel %vm483_vm6, -1e+09, %v973_v12 }
 0x9d4   : > { %v975_v17 = vsel %vm435_vm5, %v974_v16, -inf }
 0x9d5   : > { %976 = vmax.xlane.f32.xlu1 %v975_v17 }
 0x9e6   : > { %987 = vrot.lane.b32.xlu1 %v1442_v30, %s1350_s22 }
 0xa62   : > { %v977_v18 = vpop.xlane.xlu1 %976 }
 0xa63   : > { %v978_v19 = vsub.f32 %v974_v16, %v977_v18 }
 0xa65   : > { %v979_v20 = vmul.f32 1.442695, %v978_v19 }
 0xa66   : > { %v988_v21 = vpop.permute.xlu1 %987 }
 0xa67   : > { %1326 = vpow2.f32 %v979_v20  ;;  %v993_v8 = vsel %vm502_vm4, %v988_v21, 0 }
 0xa68   : > { %1276 = vmatpush3.bf16.msra.mxu1 %v993_v8 }
 0xa71   : > { %v1327_v22 = vpop.eup %1326 }
 0xa72   : > { %v981_v23 = vsel %vm435_vm5, %v1327_v22, 0.0 }
 0xa73   : > { %982 = vadd.xlane.f32.xlu0 %v981_v23 }
 0xa9e   : > { %v916_v30 = vpop.f32.mrb[16].mxu1 }
 0xa9f   : > { %v922_v26 = vadd.f32 %v916_v30, %v761_v54  ;;  %v1267_v27 = vpop.f32.mrb[17].mxu1 }
 0xaa0   : > { %v919_v28 = vpop.f32.mrb[18].mxu1 }
 0xaa1   : > { %v1268_v29 = vpop.f32.mrb[19].mxu1 }
 0xb00   : > { %v983_v31 = vpop.xlane.xlu0 %982 }
 0xb01   : > { %1328 = vrcp.f32 %v983_v31 }
 0xb0b   : > { %v1329_v32 = vpop.eup %1328 }
 0xb0c   : > { %v985_v33 = vmul.f32 %v1329_v32, %v1327_v22 }
 0xb0e   : > { %v986_v34 = vpack.c.bf16 %v985_v33, %v985_v33 }
 0xb10   : > { %1278 = vmatmul.mubr.msk.bf16.vlgmr.msra.gmra.mrb[20].mxu1 %vm435_vm5, %v986_v34 }
 0xbe3   : > { %v1029_v35 = vpop.f32.mrb[20].mxu1 }
 0xbe4   : > { %v1035_v37 = vpack.c.bf16 %v1029_v35, %v1029_v35  ;;  %v1279_v38 = vpop.f32.mrb[21].mxu1 }
 0xbe5   : > { %v1032_v39 = vpop.f32.mrb[22].mxu1 }
 0xbe6   : > { %v1280_v40 = vpop.f32.mrb[23].mxu1  ;;  %1284 = vmatmul.mubr.msk.bf16.vlgmr.msra.gmra.mrb[24].mxu0 %vm435_vm5, %v1035_v37 }
 0xcb9   : > { %v1077_v41 = vpop.f32.mrb[24].mxu0 }
 0xcba   : > { %v1083_v42 = vadd.f32 %v1077_v41, %v922_v26  ;;  %v1285_v43 = vpop.f32.mrb[25].mxu0 }
 0xcbb   : > { %v1080_v44 = vpop.f32.mrb[26].mxu0 }
 0xcbc   : > { %v1084_v45 = vadd.f32 %v1083_v42, %v1410_v0  ;;  %v1286_v46 = vpop.f32.mrb[27].mxu0 }
 0xcbe   : > { %1085 = vst.msk [vmem:[%s317_s28] sm:$0xff] %vm322_vm0, %v1084_v45 }
 0xcbf PF: > { %s18_s27 = sadd.s32 1, %s1336_s27  }
 0xcc0   : > { %p15_p4 = scmp.ge.s32.totalorder %s18_s27, 4  }
 0xcc2   :  { %17 = sbr.rel (!%p15_p4) target bundleno = 1 (0x1), region = 85 }

// kernel: decoder_forward.11
= control target key start
LH: loop header
LB: loop body
LE: loop exit
PB: predicated region body
PF: predicated region fallthrough
CT: control target
= control target key end

     0   :  { %vm31_vm0 = vcmask 261120   ;;  %v310_v14 = vmov 0.0   ;;  %vm311_vm1 = vmmov 0   ;;  %vm192_vm6 = vcmask 523264   ;;  %s411_s0 = inlined_call_operand.vmem [shape: f32[16,32], index: 0, kind: input, shape index: {}]   ;;  %s412_s3 = inlined_call_operand.vmem [shape: bf16[32,64], index: 3, kind: input, shape index: {}]   ;;  %s413_s5 = inlined_call_operand.vmem [shape: bf16[64,32], index: 5, kind: input, shape index: {}]   ;;  %s414_s1 = inlined_call_operand.vmem [shape: f32[1,32], index: 1, kind: input, shape index: {}]   ;;  %s415_s2 = inlined_call_operand.vmem [shape: f32[1,32], index: 2, kind: input, shape index: {}]   ;;  %s416_s4 = inlined_call_operand.vmem [shape: f32[1,64], index: 4, kind: input, shape index: {}]   ;;  %s417_s6 = inlined_call_operand.vmem [shape: f32[1,32], index: 6, kind: input, shape index: {}]   ;;  %s418_s7 = inlined_call_operand.vmem [shape: f32[16,32], index: 7, kind: output, shape index: {}]  }
   0x1   :  { %v355_v0 = vld [vmem:[%s411_s0] sm:$0xff]  ;;  %v360_v1 = vld [vmem:[%s411_s0 + $0x8] sm:$0xff]  ;;  %274 = vmatprep.subr.bf16.mxu0 %v310_v14  ;;  %278 = vmatprep.mubr.msk.bf16.mxu0 %vm311_vm1, %v310_v14  ;;  %v300_v46 = vld [vmem:[%s413_s5 + $0x10] sm:$0xff]  }
   0x2   :  { %v32_v2 = vsel %vm31_vm0, %v355_v0, 0.0  ;;  %v35_v3 = vsel %vm31_vm0, %v360_v1, 0.0  ;;  %v296_v15 = vld [vmem:[%s412_s3] sm:$0xff]   ;;  %282 = vmatprep.subr.bf16.mxu1 %v310_v14  ;;  %290 = vmatprep.mubr.msk.bf16.mxu1 %vm311_vm1, %v310_v14  ;;  %v297_v16 = vld [vmem:[%s412_s3 + $0x8] sm:$0xff]   ;;  %v301_v47 = vld [vmem:[%s413_s5 + $0x18] sm:$0xff]  }
   0x3   :  { %33 = vadd.xlane.f32.xlu0 %v32_v2  ;;  %275 = vmatpush3.bf16.msra.mxu0 %v296_v15  ;;  %v298_v17 = vld [vmem:[%s413_s5] sm:$0xff]   ;;  %v299_v18 = vld [vmem:[%s413_s5 + $0x8] sm:$0xff]  }
   0x4   :  { %276 = vmatprep.subr.bf16.mxu0 %v310_v14  ;;  %283 = vmatpush3.bf16.msra.mxu1 %v298_v17  ;;  %v254_v35 = vld [vmem:[%s414_s1] ss:$0 sm:$0xff] }
   0x5   :  { %284 = vmatprep.subr.bf16.mxu1 %v310_v14  ;;  %v255_v41 = vld [vmem:[%s415_s2] ss:$0 sm:$0xff] }
   0x6   :  { %v256_v48 = vld [vmem:[%s416_s4] ss:$0 sm:$0xff] }
   0x7   :  { %36 = vadd.xlane.f32.xlu0 %v35_v3  ;;  %277 = vmatpush3.bf16.msra.mxu0 %v297_v16  ;;  %v265_v59 = vld [vmem:[%s417_s6] ss:$0 sm:$0xff] }
   0x8   :  { %285 = vmatpush3.bf16.msra.mxu1 %v299_v18 }
   0x9   :  { %286 = vmatprep.subr.bf16.mxu1 %v310_v14 }
   0xc   :  { %287 = vmatpush3.bf16.msra.mxu1 %v300_v46 }
   0xd   :  { %288 = vmatprep.subr.bf16.mxu1 %v310_v14 }
  0x10   :  { %289 = vmatpush3.bf16.msra.mxu1 %v301_v47 }
  0x90   :  { %v34_v4 = vpop.xlane.xlu0 %33 }
  0x91   :  { %v39_v5 = vmul.f32 0.03125, %v34_v4 }
  0x93   :  { %v41_v6 = vsub.f32 %v355_v0, %v39_v5 }
  0x94   :  { %v37_v7 = vpop.xlane.xlu0 %36 }
  0x95   :  { %v40_v8 = vmul.f32 0.03125, %v37_v7  ;;  %v43_v9 = vmul.f32 %v41_v6, %v41_v6  ;;  %v59_v37 = vmul.f32 %v254_v35, %v41_v6 }
  0x97   :  { %v42_v10 = vsub.f32 %v360_v1, %v40_v8  ;;  %v45_v11 = vsel %vm31_vm0, %v43_v9, 0.0 }
  0x98   :  { %46 = vadd.xlane.f32.xlu1 %v45_v11 }
  0x99   :  { %v44_v12 = vmul.f32 %v42_v10, %v42_v10  ;;  %v60_v38 = vmul.f32 %v254_v35, %v42_v10 }
  0x9b   :  { %v48_v13 = vsel %vm31_vm0, %v44_v12, 0.0 }
  0x9c   :  { %49 = vadd.xlane.f32.xlu1 %v48_v13 }
 0x125   :  { %v47_v19 = vpop.xlane.xlu1 %46 }
 0x126   :  { %v51_v20 = vmul.f32 0.032258064, %v47_v19 }
 0x128   :  { %302 = vrsqrt.f32 %v51_v20  ;;  %vm63_vm2 = vcmp.eq.f32.partialorder %v51_v20, inf  ;;  %v66_v25 = vand.u32 2147483648, %v51_v20  ;;  %vm65_vm3 = vcmp.eq.f32.partialorder %v51_v20, 0.0 }
 0x129   :  { %v50_v21 = vpop.xlane.xlu1 %49 }
 0x12a   :  { %v52_v22 = vmul.f32 0.032258064, %v50_v21 }
 0x12c   :  { %304 = vrsqrt.f32 %v52_v22  ;;  %vm70_vm4 = vcmp.eq.f32.partialorder %v52_v22, inf  ;;  %v73_v31 = vand.u32 2147483648, %v52_v22  ;;  %vm72_vm5 = vcmp.eq.f32.partialorder %v52_v22, 0.0 }
 0x132   :  { %v303_v23 = vpop.eup %302 }
 0x133   :  { %v62_v24 = vmul.f32 %v303_v23, %v51_v20 }
 0x135   :  { %v64_v26 = vsel %vm63_vm2, %v51_v20, %v62_v24 }
 0x136   :  { %v305_v27 = vpop.eup %304  ;;  %v67_v28 = vsel %vm65_vm3, %v66_v25, %v64_v26 }
 0x137   :  { %v75_v29 = vadd.f32 1e-06, %v67_v28  ;;  %v69_v30 = vmul.f32 %v305_v27, %v52_v22 }
 0x139   :  { %306 = vrcp.f32 %v75_v29  ;;  %v71_v32 = vsel %vm70_vm4, %v52_v22, %v69_v30 }
 0x13a   :  { %v74_v33 = vsel %vm72_vm5, %v73_v31, %v71_v32 }
 0x13b   :  { %v76_v34 = vadd.f32 1e-06, %v74_v33 }
 0x13d   :  { %308 = vrcp.f32 %v76_v34 }
 0x143   :  { %v307_v36 = vpop.eup %306 }
 0x144   :  { %v78_v39 = vmul.f32 %v307_v36, %v59_v37 }
 0x146   :  { %v87_v43 = vadd.f32 %v255_v41, %v78_v39 }
 0x147   :  { %v309_v40 = vpop.eup %308 }
 0x148   :  { %v80_v42 = vmul.f32 %v309_v40, %v60_v38 }
 0x14a   :  { %v88_v44 = vadd.f32 %v255_v41, %v80_v42 }
 0x14c   :  { %v93_v45 = vpack.c.bf16 %v88_v44, %v87_v43 }
 0x14e   :  { %279 = vmatmul.mubr.msk.bf16.vlgmr.msra.gmra.mrb[0].mxu0 %vm31_vm0, %v93_v45 }
 0x221   :  { %v150_v49 = vpop.f32.mrb[0].mxu0 }
 0x222   :  { %v151_v50 = vadd.f32 %v256_v48, %v150_v49  ;;  %v280_v51 = vpop.f32.mrb[1].mxu0 }
 0x223   :  { %v153_v52 = vpop.f32.mrb[2].mxu0 }
 0x224   :  { %v154_v53 = vadd.f32 %v256_v48, %v153_v52  ;;  %v281_v54 = vpop.f32.mrb[3].mxu0  ;;  %v157_v55 = vmax.f32 %v151_v50, 0.0 }
 0x226   :  { %v158_v56 = vmax.f32 %v154_v53, 0.0 }
 0x228   :  { %v167_v57 = vpack.c.bf16 %v158_v56, %v157_v55 }
 0x22a   :  { %291 = vmatmul.mubr.msk.bf16.vlgmr.msra.gmra.mrb[0].mxu1 %vm192_vm6, %v167_v57 }
 0x2fd   :  { %v230_v58 = vpop.f32.mrb[0].mxu1 }
 0x2fe   :  { %v237_v60 = vadd.f32 %v230_v58, %v355_v0  ;;  %v292_v61 = vpop.f32.mrb[1].mxu1 }
 0x2ff   :  { %v233_v62 = vpop.f32.mrb[2].mxu1 }
 0x300   :  { %v246_v63 = vadd.f32 %v265_v59, %v237_v60  ;;  %v238_v2 = vadd.f32 %v233_v62, %v360_v1  ;;  %v293_v3 = vpop.f32.mrb[3].mxu1 }
 0x302   :  { %248 = vst.msk [vmem:[%s418_s7] sm:$0xff] %vm31_vm0, %v246_v63  ;;  %v247_v4 = vadd.f32 %v265_v59, %v238_v2 }
 0x304   :  { %249 = vst.msk [vmem:[%s418_s7 + $0x8] sm:$0xff] %vm31_vm0, %v247_v4 }

// kernel: decoder_forward.15
= control target key start
LH: loop header
LB: loop body
LE: loop exit
PB: predicated region body
PF: predicated region fallthrough
CT: control target
= control target key end

     0   :  { %vm17_vm0 = vcmask 261120   ;;  %s167_s0 = inlined_call_operand.vmem [shape: f32[16,32], index: 0, kind: input, shape index: {}]   ;;  %s168_s1 = inlined_call_operand.vmem [shape: f32[1,32], index: 1, kind: input, shape index: {}]   ;;  %s169_s2 = inlined_call_operand.vmem [shape: f32[1,32], index: 2, kind: input, shape index: {}]   ;;  %s170_s3 = inlined_call_operand.hbm [shape: f32[16,32], index: 3, kind: output, shape index: {}]  }
   0x1   :  { %v15_v0 = vld [vmem:[%s167_s0] sm:$0xff]  ;;  %v16_v1 = vld [vmem:[%s167_s0 + $0x8] sm:$0xff] }
   0x2   :  { %v18_v2 = vsel %vm17_vm0, %v15_v0, 0.0 }
   0x3   :  { %8 = vsyncpa [#allocation3], 0  ;;  %19 = vadd.xlane.f32.xlu0 %v18_v2  ;;  %v21_v3 = vsel %vm17_vm0, %v16_v1, 0.0  ;;  %v81_v20 = vld [vmem:[%s168_s1] ss:$0 sm:$0xff]  ;;  %s114_s19 = smov [#allocation2]  }
   0x4   :  { %v82_v23 = vld [vmem:[%s169_s2] ss:$0 sm:$0xff]  ;;  %s70_s20 = sshll.u32 %s114_s19, 4  ;;  %s71_s20 = int_to_ptr.vmem [resolvable:$true] %s70_s20 }
   0x5   :  { %s90_s1 = scalar_lea.vmem %s71_s20, 256  ;;  %p95_p1 = scmp.lt.s32.totalorder %s71_s20, %s71_s20 }
   0x6   :  { %p91_p0 = scmp.ne.s32.totalorder %s71_s20, %s90_s1  ;;  %p96_p2 = scmp.lt.s32.totalorder %s90_s1, %s90_s1 }
   0x7   :  { %22 = vadd.xlane.f32.xlu0 %v21_v3 }
   0x8   :  { %p97_p3 = por %p96_p2, %p95_p1 }
   0xa   :  { %p98_p4 = pnand %p97_p3, %p91_p0 }
  0x90   :  { %v20_v4 = vpop.xlane.xlu0 %19 }
  0x91   :  { %v25_v5 = vmul.f32 0.03125, %v20_v4 }
  0x93   :  { %v27_v6 = vsub.f32 %v15_v0, %v25_v5 }
  0x94   :  { %v23_v7 = vpop.xlane.xlu0 %22 }
  0x95   :  { %v26_v8 = vmul.f32 0.03125, %v23_v7  ;;  %v29_v9 = vmul.f32 %v27_v6, %v27_v6  ;;  %v46_v21 = vmul.f32 %v81_v20, %v27_v6 }
  0x97   :  { %v28_v10 = vsub.f32 %v16_v1, %v26_v8  ;;  %v31_v11 = vsel %vm17_vm0, %v29_v9, 0.0 }
  0x98   :  { %32 = vadd.xlane.f32.xlu1 %v31_v11 }
  0x99   :  { %v30_v12 = vmul.f32 %v28_v10, %v28_v10  ;;  %v47_v25 = vmul.f32 %v81_v20, %v28_v10 }
  0x9b   :  { %v34_v13 = vsel %vm17_vm0, %v30_v12, 0.0 }
  0x9c   :  { %35 = vadd.xlane.f32.xlu1 %v34_v13 }
 0x125   :  { %v33_v14 = vpop.xlane.xlu1 %32 }
 0x126   :  { %v37_v15 = vmul.f32 0.03125, %v33_v14 }
 0x128   :  { %v48_v16 = vadd.f32 1e-05, %v37_v15 }
 0x129   :  { %v36_v17 = vpop.xlane.xlu1 %35 }
 0x12a   :  { %86 = vrsqrt.f32 %v48_v16  ;;  %v38_v18 = vmul.f32 0.03125, %v36_v17 }
 0x12c   :  { %v49_v19 = vadd.f32 1e-05, %v38_v18 }
 0x12e   :  { %88 = vrsqrt.f32 %v49_v19 }
 0x134   :  { %v87_v22 = vpop.eup %86 }
 0x135   :  { %v52_v24 = vmul.f32 %v87_v22, %v46_v21 }
 0x137   :  { %v61_v26 = vadd.f32 %v82_v23, %v52_v24 }
 0x138   :  { %v89_v27 = vpop.eup %88 }
 0x139   :  { %v53_v28 = vmul.f32 %v89_v27, %v47_v25  ;;  %63 = vst.msk [vmem:[#allocation2] sm:$0xff] %vm17_vm0, %v61_v26 }
 0x13b   :  { %v62_v29 = vadd.f32 %v82_v23, %v53_v28 }
 0x13d   :  { %64 = vst.msk [vmem:[#allocation2 + $0x8] sm:$0xff] %vm17_vm0, %v62_v29 }
 0x13e   :  { %101 = shalt.err (!%p98_p4)
}
 0x13f   :  { %s102_s22 = scalar_lea.hbm %s170_s3, 256 }
 0x140   :  { %p103_p5 = scmp.ne.s32.totalorder %s170_s3, %s102_s22  ;;  %p106_p6 = scmp.lt.u32.totalorder %s102_s22, %s170_s3 }
 0x142   :  { %p108_p7 = pnand %p106_p6, %p103_p5 }
 0x144   :  { %111 = shalt.err (!%p108_p7)
}
 0x145   :  { %s115_s27 = smov 128   ;;  %s116_s28 = smov 8  }
 0x146   :  { %76 = dma.vmem_to_hbm [thread:$0]  %s71_s20, 256, %s170_s3, [#allocation3], %s115_s27, %s115_s27, %s116_s28  }
 0x147   :  { %112 = dma.done.wait [#allocation3], 256  }
 0x148   :  { %113 = vsyncadd [#allocation3], 4294967040 }
 0x149   :  { %80 = vsyncpa [#allocation3], 1 }

</bundles_post_ra>
